<compile_context>
chip_gen: v6e
topology: v6e:2x2x1
jax: 0.10.0
libtpu: 0.0.40
codegen_flags: <defaults>
</compile_context>

<pallas_src>
import functools

import jax
import jax.numpy as jnp
from jax import lax
from jax.experimental import pallas as pl
from jax.experimental.pallas import tpu as pltpu

GROUP = 128                      # quantization group size (matches the PyTorch module)

_NT = (((1,), (1,)), ((), ()))   # contract dim 1 of both operands (NT form, no transpose)


def _mxu_operand_dtypes():
    """Pick MXU operand/accumulator dtypes for the current TPU generation.

    v5e/v5p/v6e have a native int8 MXU -> exact s8 x s8 -> s32 per-group dots.
    Anything else (v7x has no integer MXU; v4/unknown) uses bf16 operands with f32
    accumulation, which is also exact here: int4/int8 magnitudes are exactly
    representable in bf16 and every per-group integer dot is far below 2^24.
    """
    try:
        kind = jax.devices()[0].device_kind.lower()
    except Exception:
        kind = ""
    if "v5" in kind or "v6" in kind:
        return jnp.int8, jnp.int32
    # TODO(synk): on v7x an fp8(e4m3) weight path (int4 values are exact in e4m3) would
    # move the dequant off the VPU at 2x the weight HBM bytes; bf16 is the portable fallback.
    return jnp.bfloat16, jnp.float32


def _unpack_nibble_planes(packed_u8):
    """Unpack group-paired packed int4 bytes into even-group / odd-group planes.

    Returns two int32 arrays shaped like `packed_u8`; columns [m*128, (m+1)*128) of the
    even (odd) plane hold the 128 channels of group 2m (2m+1), so every per-group slice
    is a 128-lane-aligned whole-vreg slice.
    """
    p = packed_u8.astype(jnp.int32)
    even = ((p & 0xF) ^ 8) - 8      # branch-free sign extension
    odd = ((p >> 4) ^ 8) - 8
    return even, odd


def pack_int4(x):
    """Pack signed int4 values [-8, 7] with the group-paired convention above.

    x: (..., ng*128).  If ng is odd a zero group is appended (zero bytes decode to 0 and
    the padded group's scale is never applied).  Returns (..., ceil(ng/2)*128) uint8.
    """
    *lead, D = x.shape
    ng = D // GROUP
    xg = x.reshape(*lead, ng, GROUP)
    if ng % 2:
        xg = jnp.concatenate([xg, jnp.zeros((*lead, 1, GROUP), xg.dtype)], axis=-2)
    lo = xg[..., 0::2, :]          # even groups
    hi = xg[..., 1::2, :]          # odd groups
    packed = ((lo & 0xF) | ((hi & 0xF) << 4)).astype(jnp.uint8)
    return packed.reshape(*lead, (ng + 1) // 2 * GROUP)


def _linear_int4_kernel(xe_ref, xo_ref, xs_ref, x8_ref, x8s_ref,
                        wq_ref, ws_ref, w8_ref, w8s_ref,
                        o_ref, we_ref, wod_ref, *, ng, op_dtype, acc_dtype):
    """One (token-tile, feature-tile) block of the mixed int4/int8 GEMM.

    Exact per-group integer contractions; the fp scales are applied to the (tb, tn)
    partials afterwards (matches the reference numerics).
    """
    f32 = jnp.float32

    # Unpack the packed int4 weight tile once per output-feature tile; the unpacked
    # even/odd-group planes live in VMEM scratch and are reused across token tiles.
    @pl.when(pl.program_id(1) == 0)
    def _():
        p = wq_ref[...].astype(jnp.int32)
        we_ref[...] = (((p & 0xF) ^ 8) - 8).astype(op_dtype)
        wod_ref[...] = (((p >> 4) ^ 8) - 8).astype(op_dtype)

    # int8 outlier channels (128 of them): exact integer dot, rank-1 scales applied after.
    x8 = x8_ref[...]
    w8 = w8_ref[...]
    if op_dtype is not jnp.int8:
        x8 = x8.astype(op_dtype)
        w8 = w8.astype(op_dtype)
    p8 = lax.dot_general(x8, w8, _NT, preferred_element_type=acc_dtype)
    acc = p8.astype(f32) * (x8s_ref[...] * w8s_ref[...])          # (tb,1)*(1,tn)

    # int4 body: one exact K=128 contraction per group, scales applied post-dot.
    xe = xe_ref[...]
    xo = xo_ref[...]
    for m in range((ng + 1) // 2):
        cols = slice(m * GROUP, (m + 1) * GROUP)                  # 128-lane aligned slice
        g = 2 * m
        pe = lax.dot_general(xe[:, cols], we_ref[:, cols], _NT,
                             preferred_element_type=acc_dtype)
        acc = acc + pe.astype(f32) * (xs_ref[g] * ws_ref[g])
        if g + 1 < ng:                                            # skip the zero pad group
            po = lax.dot_general(xo[:, cols], wod_ref[:, cols], _NT,
                                 preferred_element_type=acc_dtype)
            acc = acc + po.astype(f32) * (xs_ref[g + 1] * ws_ref[g + 1])

    # TODO(synk): store float16 directly once f16 stores are relied on for every target
    # generation; bf16 halves the writeback and the extra rounding is ~2^-9 relative.
    o_ref[...] = acc.astype(o_ref.dtype)


class LinearInt4:
    """JAX/Pallas port of punica LinearInt4 (forward only, bias=False, fp16 output)."""

    def __init__(self, in_features, out_features, out_dtype, key):
        assert in_features % GROUP == 0 and in_features > GROUP
        self.in_features = in_features
        self.out_features = out_features
        self.out_dtype = out_dtype
        self.n_groups = in_features // GROUP - 1                  # int4 groups
        self._op_dtype, self._acc_dtype = _mxu_operand_dtypes()

        k1, k2, k3, k4 = jax.random.split(key, 4)
        # Deterministic synthetic quantized weights (same logical content as the torch
        # nn.Parameters; weight_int4 is stored in the kernel's group-paired packing,
        # padded to an even number of groups).
        w4_vals = jax.random.randint(k1, (out_features, in_features - GROUP), -8, 8)
        self.weight_int4 = pack_int4(w4_vals)                               # (N, P*128) uint8
        self.weight_int8 = jax.random.randint(
            k2, (out_features, GROUP), -128, 128).astype(jnp.int8)          # (N, 128) int8
        self.scale_int4 = jax.random.uniform(
            k3, (self.n_groups, out_features), jnp.float32, 0.005, 0.02
        ).astype(jnp.float16)                                               # (ng, N) fp16
        self.scale_int8 = jax.random.uniform(
            k4, (out_features,), jnp.float32, 0.005, 0.02).astype(jnp.float16)  # (N,) fp16

        # Kernel-friendly static views (built once at init, no per-call cost):
        self._scale4_k = self.scale_int4.astype(jnp.float32)[:, None, :]    # (ng, 1, N) f32
        self._scale8_row = self.scale_int8.astype(jnp.float32).reshape(1, out_features)
        self._w4_vals_ref = w4_vals          # only for the reference check in __main__

    def __call__(self, inputs, *, tn=None):
        outlier, norms, outlier_scales, norm_scales = inputs
        if self.out_dtype != 'fp16':
            # TODO(synk): the 'int4' output path (dense_layer_gemm_i4_o4) requantizes the
            # output; not implemented here.
            raise NotImplementedError("only the fp16 output path is implemented")

        op_dt, acc_dt = self._op_dtype, self._acc_dtype
        N, ng = self.out_features, self.n_groups
        n_pairs = (ng + 1) // 2
        wp = n_pairs * GROUP                 # packed bytes per row (padded_groups * 64)

        if tn is None:       # 256 keeps per-tile VMEM modest even on v7x (64 MiB VMEM)
            tn = next((t for t in (256, 512, 128) if N % t == 0), N)
        assert N % tn == 0

        # Token tiling: a single resident block for decode-sized calls, 256-row tiles
        # for prefill so activations / outputs never blow the VMEM budget.
        B0 = norms.shape[0]
        tb = 256 if B0 > 256 else ((B0 + 7) // 8) * 8
        B = ((B0 + tb - 1) // tb) * tb
        if B != B0:
            padr = lambda a: jnp.pad(a, ((0, B - B0),) + ((0, 0),) * (a.ndim - 1))
            norms, outlier = padr(norms), padr(outlier)
            norm_scales, outlier_scales = padr(norm_scales), padr(outlier_scales)

        # Hoisted activation dequant (previously redone inside the kernel for every
        # output-feature tile): unpack once here, feed MXU-ready integer planes.
        x_even, x_odd = _unpack_nibble_planes(norms)
        x_even = x_even.astype(op_dt)                            # (B, wp)
        x_odd = x_odd.astype(op_dt)                              # (B, wp)
        xs3 = norm_scales.astype(jnp.float32).T[:, :, None]      # (ng, B, 1)
        x8s = outlier_scales.astype(jnp.float32).reshape(B, 1)   # (B, 1)

        grid = (N // tn, B // tb)            # feature tiles outer, token tiles inner
        kernel = functools.partial(_linear_int4_kernel, ng=ng,
                                   op_dtype=op_dt, acc_dtype=acc_dt)

        # TODO(synk): for very large in_features add a K-reduction grid axis (blocks of
        # groups + f32 VMEM accumulator with pl.when init/finalize).
        out = pl.pallas_call(
            kernel,
            out_shape=jax.ShapeDtypeStruct((B, N), jnp.bfloat16),
            grid_spec=pltpu.PrefetchScalarGridSpec(
                num_scalar_prefetch=0,
                grid=grid,
                in_specs=[
                    pl.BlockSpec((tb, wp), lambda j, i: (i, 0)),        # even-group acts
                    pl.BlockSpec((tb, wp), lambda j, i: (i, 0)),        # odd-group acts
                    pl.BlockSpec((ng, tb, 1), lambda j, i: (0, i, 0)),  # act group scales
                    pl.BlockSpec((tb, GROUP), lambda j, i: (i, 0)),     # int8 outlier acts
                    pl.BlockSpec((tb, 1), lambda j, i: (i, 0)),         # outlier act scales
                    pl.BlockSpec((tn, wp), lambda j, i: (j, 0)),        # packed int4 weights
                    pl.BlockSpec((ng, 1, tn), lambda j, i: (0, 0, j)),  # weight group scales
                    pl.BlockSpec((tn, GROUP), lambda j, i: (j, 0)),     # int8 outlier weights
                    pl.BlockSpec((1, tn), lambda j, i: (0, j)),         # outlier weight scales
                ],
                out_specs=pl.BlockSpec((tb, tn), lambda j, i: (i, j)),
                scratch_shapes=[pltpu.VMEM((tn, wp), op_dt),            # unpacked even groups
                                pltpu.VMEM((tn, wp), op_dt)],           # unpacked odd groups
            ),
            compiler_params=pltpu.CompilerParams(
                # token axis is innermost + "arbitrary" so the weight-unpack scratch cache
                # (pl.when(token_tile == 0)) stays valid; feature axis shards across cores.
                dimension_semantics=("parallel", "arbitrary"),
                vmem_limit_bytes=64 * 1024 * 1024,
            ),
        )(x_even, x_odd, xs3, outlier, x8s,
          self.weight_int4, self._scale4_k, self.weight_int8, self._scale8_row)

        return out[:B0].astype(jnp.float16)      # out_dtype == 'fp16'


def reference(x4, w4, norm_scales, scale4, x8, w8, out_scales, scale8):
    """Plain-JAX reference of the mixed-precision GEMM (original channel order)."""
    B, D4 = x4.shape
    N = w4.shape[0]
    g = D4 // GROUP
    xg = x4.astype(jnp.float32).reshape(B, g, GROUP)
    wg = w4.astype(jnp.float32).reshape(N, g, GROUP)
    part = jnp.einsum('bgk,ngk->bgn', xg, wg)
    part = part * norm_scales.astype(jnp.float32)[:, :, None] \
                * scale4.astype(jnp.float32)[None, :, :]
    out = part.sum(axis=1)
    out = out + (x8.astype(jnp.float32) @ w8.astype(jnp.float32).T) \
                * out_scales.astype(jnp.float32)[:, None] \
                * scale8.astype(jnp.float32)[None, :]
    return out.astype(jnp.float16)


if __name__ == "__main__":
    # ng = 3 int4 groups (odd, exercises the zero-pad group) + 128 outlier channels;
    # tokens = 6 exercises the token padding path.
    in_features, out_features, tokens = 512, 512, 6
    key = jax.random.PRNGKey(0)
    kw, k1, k2, k3, k4 = jax.random.split(key, 5)

    layer = LinearInt4(in_features, out_features, 'fp16', kw)

    # Deterministic synthetic quantized inputs (the tuple the module's forward expects).
    x4_vals = jax.random.randint(k1, (tokens, in_features - GROUP), -8, 8)       # int4 acts
    norms = pack_int4(x4_vals)                                                   # (B, 256) uint8
    outlier = jax.random.randint(k2, (tokens, GROUP), -64, 64).astype(jnp.int8)  # (B, 128) int8
    norm_scales = jax.random.uniform(
        k3, (tokens, layer.n_groups), jnp.float32, 0.005, 0.02).astype(jnp.float16)
    outlier_scales = jax.random.uniform(
        k4, (tokens,), jnp.float32, 0.005, 0.02).astype(jnp.float16)

    out = layer((outlier, norms, outlier_scales, norm_scales))
    out = jax.block_until_ready(out)

    ref = reference(x4_vals, layer._w4_vals_ref, norm_scales, layer.scale_int4,
                    outlier, layer.weight_int8, outlier_scales, layer.scale_int8)

    assert out.shape == (tokens, out_features) and out.dtype == jnp.float16
    assert jnp.allclose(out.astype(jnp.float32), ref.astype(jnp.float32),
                        rtol=1e-2, atol=1e-2), "mismatch vs reference"
    print("KERNEL_OK")
</pallas_src>

<mosaic_0001>
module attributes {stable_mosaic.version = 11 : i64} {
  func.func @_linear_int4_kernel(%arg0: i32, %arg1: i32, %arg2: memref<8x256xbf16, #tpu.memory_space<vmem>>, %arg3: memref<8x256xbf16, #tpu.memory_space<vmem>>, %arg4: memref<3x8x1xf32, #tpu.memory_space<vmem>>, %arg5: memref<8x128xi8, #tpu.memory_space<vmem>>, %arg6: memref<8x1xf32, #tpu.memory_space<vmem>>, %arg7: memref<256x256xi8, #tpu.memory_space<vmem>>, %arg8: memref<3x1x256xf32, #tpu.memory_space<vmem>>, %arg9: memref<256x128xi8, #tpu.memory_space<vmem>>, %arg10: memref<1x256xf32, #tpu.memory_space<vmem>>, %arg11: memref<8x256xbf16, #tpu.memory_space<vmem>>, %arg12: memref<256x256xbf16, #tpu.memory_space<vmem>>, %arg13: memref<256x256xbf16, #tpu.memory_space<vmem>>) attributes {dimension_semantics = [#tpu.dimension_semantics<parallel>, #tpu.dimension_semantics<arbitrary>], iteration_bounds = array<i64: 2, 1>, scalar_prefetch = 0 : i64, scratch_operands = 2 : i64, tpu.core_type = #tpu.core_type<tc>, window_params = [{transform_indices = @transform_0, window_bounds = array<i64: 8, 256>}, {transform_indices = @transform_1, window_bounds = array<i64: 8, 256>}, {transform_indices = @transform_2, window_bounds = array<i64: 3, 8, 1>}, {transform_indices = @transform_3, window_bounds = array<i64: 8, 128>}, {transform_indices = @transform_4, window_bounds = array<i64: 8, 1>}, {transform_indices = @transform_5, window_bounds = array<i64: 256, 256>}, {transform_indices = @transform_6, window_bounds = array<i64: 3, 1, 256>}, {transform_indices = @transform_7, window_bounds = array<i64: 256, 128>}, {transform_indices = @transform_8, window_bounds = array<i64: 1, 256>}, {transform_indices = @transform_9, window_bounds = array<i64: 8, 256>}]} {
    %c0_i32 = arith.constant 0 : i32
    %0 = arith.cmpi eq, %arg1, %c0_i32 : i32
    %1 = arith.extui %0 : i1 to i32
    %c0_i32_0 = arith.constant 0 : i32
    %2 = arith.cmpi ne, %1, %c0_i32_0 : i32
    scf.if %2 {
      %c0_38 = arith.constant 0 : index
      %c0_39 = arith.constant 0 : index
      %54 = vector.load %arg7[%c0_38, %c0_39] : memref<256x256xi8, #tpu.memory_space<vmem>>, vector<256x256xi8>
      %55 = arith.extui %54 : vector<256x256xi8> to vector<256x256xi32>
      %c15_i32 = arith.constant 15 : i32
      %56 = vector.broadcast %c15_i32 : i32 to vector<256x256xi32>
      %57 = arith.andi %55, %56 : vector<256x256xi32>
      %c8_i32 = arith.constant 8 : i32
      %58 = vector.broadcast %c8_i32 : i32 to vector<256x256xi32>
      %59 = arith.xori %57, %58 : vector<256x256xi32>
      %c8_i32_40 = arith.constant 8 : i32
      %60 = vector.broadcast %c8_i32_40 : i32 to vector<256x256xi32>
      %61 = arith.subi %59, %60 : vector<256x256xi32>
      %62 = arith.sitofp %61 : vector<256x256xi32> to vector<256x256xbf16>
      %c0_41 = arith.constant 0 : index
      %c0_42 = arith.constant 0 : index
      %63 = vector.load %arg12[%c0_41, %c0_42] : memref<256x256xbf16, #tpu.memory_space<vmem>>, vector<256x256xbf16>
      tpu.vector_store %arg12[%c0_41, %c0_42], %62 {strides = array<i32>} : memref<256x256xbf16, #tpu.memory_space<vmem>>, vector<256x256xbf16>,
      %c4_i32 = arith.constant 4 : i32
      %64 = vector.broadcast %c4_i32 : i32 to vector<256x256xi32>
      %65 = arith.shrsi %55, %64 : vector<256x256xi32>
      %c8_i32_43 = arith.constant 8 : i32
      %66 = vector.broadcast %c8_i32_43 : i32 to vector<256x256xi32>
      %67 = arith.xori %65, %66 : vector<256x256xi32>
      %c8_i32_44 = arith.constant 8 : i32
      %68 = vector.broadcast %c8_i32_44 : i32 to vector<256x256xi32>
      %69 = arith.subi %67, %68 : vector<256x256xi32>
      %70 = arith.sitofp %69 : vector<256x256xi32> to vector<256x256xbf16>
      %c0_45 = arith.constant 0 : index
      %c0_46 = arith.constant 0 : index
      %71 = vector.load %arg13[%c0_45, %c0_46] : memref<256x256xbf16, #tpu.memory_space<vmem>>, vector<256x256xbf16>
      tpu.vector_store %arg13[%c0_45, %c0_46], %70 {strides = array<i32>} : memref<256x256xbf16, #tpu.memory_space<vmem>>, vector<256x256xbf16>,
    } else {
    }
    %c0 = arith.constant 0 : index
    %c0_1 = arith.constant 0 : index
    %3 = vector.load %arg5[%c0, %c0_1] : memref<8x128xi8, #tpu.memory_space<vmem>>, vector<8x128xi8>
    %c0_2 = arith.constant 0 : index
    %c0_3 = arith.constant 0 : index
    %4 = vector.load %arg9[%c0_2, %c0_3] : memref<256x128xi8, #tpu.memory_space<vmem>>, vector<256x128xi8>
    %5 = arith.sitofp %3 : vector<8x128xi8> to vector<8x128xbf16>
    %6 = arith.sitofp %4 : vector<256x128xi8> to vector<256x128xbf16>
    %cst = arith.constant dense<0.000000e+00> : vector<8x256xf32>
    %7 = tpu.matmul %5, %6, %cst {dimension_numbers = #tpu.dot_dimension_numbers<[1], [1], [0], [0], [0, 0, 1, 0], [], []>} : vector<8x128xbf16>, vector<256x128xbf16>, vector<8x256xf32> -> vector<8x256xf32>
    %c0_4 = arith.constant 0 : index
    %c0_5 = arith.constant 0 : index
    %8 = vector.load %arg6[%c0_4, %c0_5] : memref<8x1xf32, #tpu.memory_space<vmem>>, vector<8x1xf32>
    %c0_6 = arith.constant 0 : index
    %c0_7 = arith.constant 0 : index
    %9 = vector.load %arg10[%c0_6, %c0_7] : memref<1x256xf32, #tpu.memory_space<vmem>>, vector<1x256xf32>
    %10 = vector.broadcast %8 : vector<8x1xf32> to vector<8x256xf32>
    %11 = vector.broadcast %9 : vector<1x256xf32> to vector<8x256xf32>
    %12 = arith.mulf %10, %11 : vector<8x256xf32>
    %13 = arith.mulf %7, %12 : vector<8x256xf32>
    %c0_8 = arith.constant 0 : index
    %c0_9 = arith.constant 0 : index
    %14 = vector.load %arg2[%c0_8, %c0_9] : memref<8x256xbf16, #tpu.memory_space<vmem>>, vector<8x256xbf16>
    %c0_10 = arith.constant 0 : index
    %c0_11 = arith.constant 0 : index
    %15 = vector.load %arg3[%c0_10, %c0_11] : memref<8x256xbf16, #tpu.memory_space<vmem>>, vector<8x256xbf16>
    %16 = vector.extract_strided_slice %14 {offsets = [0, 0], sizes = [8, 128], strides = [1, 1]} : vector<8x256xbf16> to vector<8x128xbf16>
    %c0_12 = arith.constant 0 : index
    %c0_13 = arith.constant 0 : index
    %17 = vector.load %arg12[%c0_12, %c0_13] : memref<256x256xbf16, #tpu.memory_space<vmem>>, vector<256x128xbf16>
    %cst_14 = arith.constant dense<0.000000e+00> : vector<8x256xf32>
    %18 = tpu.matmul %16, %17, %cst_14 {dimension_numbers = #tpu.dot_dimension_numbers<[1], [1], [0], [0], [0, 0, 1, 0], [], []>} : vector<8x128xbf16>, vector<256x128xbf16>, vector<8x256xf32> -> vector<8x256xf32>
    %c0_15 = arith.constant 0 : index
    %c0_16 = arith.constant 0 : index
    %c0_17 = arith.constant 0 : index
    %19 = vector.load %arg4[%c0_15, %c0_16, %c0_17] : memref<3x8x1xf32, #tpu.memory_space<vmem>>, vector<1x8x1xf32>
    %20 = vector.shape_cast %19 : vector<1x8x1xf32> to vector<8x1xf32>
    %c0_18 = arith.constant 0 : index
    %c0_19 = arith.constant 0 : index
    %c0_20 = arith.constant 0 : index
    %21 = vector.load %arg8[%c0_18, %c0_19, %c0_20] : memref<3x1x256xf32, #tpu.memory_space<vmem>>, vector<1x1x256xf32>
    %22 = vector.shape_cast %21 : vector<1x1x256xf32> to vector<1x256xf32>
    %23 = vector.broadcast %20 : vector<8x1xf32> to vector<8x256xf32>
    %24 = vector.broadcast %22 : vector<1x256xf32> to vector<8x256xf32>
    %25 = arith.mulf %23, %24 : vector<8x256xf32>
    %26 = arith.mulf %18, %25 : vector<8x256xf32>
    %27 = arith.addf %13, %26 : vector<8x256xf32>
    %28 = vector.extract_strided_slice %15 {offsets = [0, 0], sizes = [8, 128], strides = [1, 1]} : vector<8x256xbf16> to vector<8x128xbf16>
    %c0_21 = arith.constant 0 : index
    %c0_22 = arith.constant 0 : index
    %29 = vector.load %arg13[%c0_21, %c0_22] : memref<256x256xbf16, #tpu.memory_space<vmem>>, vector<256x128xbf16>
    %cst_23 = arith.constant dense<0.000000e+00> : vector<8x256xf32>
    %30 = tpu.matmul %28, %29, %cst_23 {dimension_numbers = #tpu.dot_dimension_numbers<[1], [1], [0], [0], [0, 0, 1, 0], [], []>} : vector<8x128xbf16>, vector<256x128xbf16>, vector<8x256xf32> -> vector<8x256xf32>
    %c1 = arith.constant 1 : index
    %c0_24 = arith.constant 0 : index
    %c0_25 = arith.constant 0 : index
    %31 = vector.load %arg4[%c1, %c0_24, %c0_25] : memref<3x8x1xf32, #tpu.memory_space<vmem>>, vector<1x8x1xf32>
    %32 = vector.shape_cast %31 : vector<1x8x1xf32> to vector<8x1xf32>
    %c1_26 = arith.constant 1 : index
    %c0_27 = arith.constant 0 : index
    %c0_28 = arith.constant 0 : index
    %33 = vector.load %arg8[%c1_26, %c0_27, %c0_28] : memref<3x1x256xf32, #tpu.memory_space<vmem>>, vector<1x1x256xf32>
    %34 = vector.shape_cast %33 : vector<1x1x256xf32> to vector<1x256xf32>
    %35 = vector.broadcast %32 : vector<8x1xf32> to vector<8x256xf32>
    %36 = vector.broadcast %34 : vector<1x256xf32> to vector<8x256xf32>
    %37 = arith.mulf %35, %36 : vector<8x256xf32>
    %38 = arith.mulf %30, %37 : vector<8x256xf32>
    %39 = arith.addf %27, %38 : vector<8x256xf32>
    %40 = vector.extract_strided_slice %14 {offsets = [0, 128], sizes = [8, 128], strides = [1, 1]} : vector<8x256xbf16> to vector<8x128xbf16>
    %c0_29 = arith.constant 0 : index
    %c128 = arith.constant 128 : index
    %41 = vector.load %arg12[%c0_29, %c128] : memref<256x256xbf16, #tpu.memory_space<vmem>>, vector<256x128xbf16>
    %cst_30 = arith.constant dense<0.000000e+00> : vector<8x256xf32>
    %42 = tpu.matmul %40, %41, %cst_30 {dimension_numbers = #tpu.dot_dimension_numbers<[1], [1], [0], [0], [0, 0, 1, 0], [], []>} : vector<8x128xbf16>, vector<256x128xbf16>, vector<8x256xf32> -> vector<8x256xf32>
    %c2 = arith.constant 2 : index
    %c0_31 = arith.constant 0 : index
    %c0_32 = arith.constant 0 : index
    %43 = vector.load %arg4[%c2, %c0_31, %c0_32] : memref<3x8x1xf32, #tpu.memory_space<vmem>>, vector<1x8x1xf32>
    %44 = vector.shape_cast %43 : vector<1x8x1xf32> to vector<8x1xf32>
    %c2_33 = arith.constant 2 : index
    %c0_34 = arith.constant 0 : index
    %c0_35 = arith.constant 0 : index
    %45 = vector.load %arg8[%c2_33, %c0_34, %c0_35] : memref<3x1x256xf32, #tpu.memory_space<vmem>>, vector<1x1x256xf32>
    %46 = vector.shape_cast %45 : vector<1x1x256xf32> to vector<1x256xf32>
    %47 = vector.broadcast %44 : vector<8x1xf32> to vector<8x256xf32>
    %48 = vector.broadcast %46 : vector<1x256xf32> to vector<8x256xf32>
    %49 = arith.mulf %47, %48 : vector<8x256xf32>
    %50 = arith.mulf %42, %49 : vector<8x256xf32>
    %51 = arith.addf %39, %50 : vector<8x256xf32>
    %52 = arith.truncf %51 : vector<8x256xf32> to vector<8x256xbf16>
    %c0_36 = arith.constant 0 : index
    %c0_37 = arith.constant 0 : index
    %53 = vector.load %arg11[%c0_36, %c0_37] : memref<8x256xbf16, #tpu.memory_space<vmem>>, vector<8x256xbf16>
    tpu.vector_store %arg11[%c0_36, %c0_37], %52 {strides = array<i32>} : memref<8x256xbf16, #tpu.memory_space<vmem>>, vector<8x256xbf16>,
    return
  }
  func.func @transform_0(%arg0: i32, %arg1: i32) -> (i32, i32) {
    %c0_i32 = arith.constant 0 : i32
    %c0_i32_0 = arith.constant 0 : i32
    return %arg1, %c0_i32 : i32, i32
  }
  func.func @transform_1(%arg0: i32, %arg1: i32) -> (i32, i32) {
    %c0_i32 = arith.constant 0 : i32
    %c0_i32_0 = arith.constant 0 : i32
    return %arg1, %c0_i32 : i32, i32
  }
  func.func @transform_2(%arg0: i32, %arg1: i32) -> (i32, i32, i32) {
    %c0_i32 = arith.constant 0 : i32
    %c0_i32_0 = arith.constant 0 : i32
    %c0_i32_1 = arith.constant 0 : i32
    return %c0_i32, %arg1, %c0_i32_0 : i32, i32, i32
  }
  func.func @transform_3(%arg0: i32, %arg1: i32) -> (i32, i32) {
    %c0_i32 = arith.constant 0 : i32
    %c0_i32_0 = arith.constant 0 : i32
    return %arg1, %c0_i32 : i32, i32
  }
  func.func @transform_4(%arg0: i32, %arg1: i32) -> (i32, i32) {
    %c0_i32 = arith.constant 0 : i32
    %c0_i32_0 = arith.constant 0 : i32
    return %arg1, %c0_i32 : i32, i32
  }
  func.func @transform_5(%arg0: i32, %arg1: i32) -> (i32, i32) {
    %c0_i32 = arith.constant 0 : i32
    %c0_i32_0 = arith.constant 0 : i32
    return %arg0, %c0_i32 : i32, i32
  }
  func.func @transform_6(%arg0: i32, %arg1: i32) -> (i32, i32, i32) {
    %c0_i32 = arith.constant 0 : i32
    %c0_i32_0 = arith.constant 0 : i32
    %c0_i32_1 = arith.constant 0 : i32
    return %c0_i32, %c0_i32_0, %arg0 : i32, i32, i32
  }
  func.func @transform_7(%arg0: i32, %arg1: i32) -> (i32, i32) {
    %c0_i32 = arith.constant 0 : i32
    %c0_i32_0 = arith.constant 0 : i32
    return %arg0, %c0_i32 : i32, i32
  }
  func.func @transform_8(%arg0: i32, %arg1: i32) -> (i32, i32) {
    %c0_i32 = arith.constant 0 : i32
    %c0_i32_0 = arith.constant 0 : i32
    return %c0_i32, %arg0 : i32, i32
  }
  func.func @transform_9(%arg0: i32, %arg1: i32) -> (i32, i32) {
    %c0_i32 = arith.constant 0 : i32
    return %arg1, %arg0 : i32, i32
  }
}

</mosaic_0001>

<bundles_post_ra>
// kernel: tpu_custom_call.1
= control target key start
LH: loop header
LB: loop body
LE: loop exit
PB: predicated region body
PF: predicated region fallthrough
CT: control target
= control target key end

     0   :  { %14 = vsyncpa [#allocation5], 0  ;;  %s3931_s0 = inlined_call_operand.vmem [shape: bf16[8,256], index: 0, kind: input, shape index: {}]   ;;  %s3932_s1 = inlined_call_operand.vmem [shape: bf16[8,256], index: 1, kind: input, shape index: {}]   ;;  %s3933_s2 = inlined_call_operand.vmem [shape: f32[3,8,1], index: 2, kind: input, shape index: {}]   ;;  %s3934_s3 = inlined_call_operand.vmem [shape: s8[8,128], index: 3, kind: input, shape index: {}]   ;;  %s3935_s4 = inlined_call_operand.vmem [shape: f32[8,1], index: 4, kind: input, shape index: {}]   ;;  %s3936_s5 = inlined_call_operand.hbm [shape: u8[512,256], index: 5, kind: input, shape index: {}]   ;;  %s3937_s6 = inlined_call_operand.vmem [shape: f32[3,1,512], index: 6, kind: input, shape index: {}]   ;;  %s3938_s7 = inlined_call_operand.hbm [shape: s8[512,128], index: 7, kind: input, shape index: {}]   ;;  %s3939_s8 = inlined_call_operand.vmem [shape: f32[1,512], index: 8, kind: input, shape index: {}]   ;;  %s3940_s9 = inlined_call_operand.hbm [shape: bf16[8,512], index: 9, kind: output, shape index: {}]  }
   0x1   :  { %16 = vsyncpa [#allocation5 + $0x1], 0 }
   0x2   :  { %17 = vsyncpa [#allocation9], 0 }
   0x3   :  { %19 = vsyncpa [#allocation9 + $0x1], 0 }
   0x4   :  { %20 = vsyncpa [#allocation6], 0 }
   0x5   :  { %22 = vsyncpa [#allocation6 + $0x1], 0  ;;  %s3329_s30 = smov 0   ;;  %s3331_s10 = smov 0  }
   0x6   :  { %s3333_s11 = smov 0   ;;  %s3335_s12 = smov 0  }
   0x7   :  { %s3337_s13 = smov 0   ;;  %s3339_s14 = smov 0  }
   0x8 LB: > { %3958 = sst [smem:[#allocation14_spill]] %s3257_s11  ;;  %s2602_s15 = sadd.s32 4294967295, %s3269_s14   ;;  %s3269_s14 = sphi %s3339_s14, %s28_s14   ;;  %s3265_s13 = sphi %s3337_s13, %s4003_s13   ;;  %s3261_s12 = sphi %s3335_s12, %s4002_s12   ;;  %s3257_s11 = sphi %s3333_s11, %s3998_s11   ;;  %s3253_s10 = sphi %s3331_s10, %s4001_s10   ;;  %s3249_s30 = sphi %s3329_s30, %s4000_s30  }
   0x9   : > { %s2603_s16 = sadd.s32 4294967294, %s3269_s14   ;;  %s40_s17 = sadd.s32 1, %s3265_s13 }
   0xa   : > { %s177_s18 = sadd.s32 1, %s3257_s11  ;;  %p42_p0 = scmp.ge.s32.totalorder %s40_s17, 2 }
   0xb   : > { %p184_p1 = scmp.ne.s32.totalorder %s3257_s11, %s3253_s10  ;;  %p185_p2 = scmp.eq.s32.totalorder %s3269_s14, 0 }
   0xc   : > { %p190_p3 = scmp.ne.s32.totalorder %s3253_s10, %s3249_s30  ;;  %s4005_s17 = smov (%p42_p0, %s40_s17), 0 }
   0xd   : > { %3959 = sst [smem:[#allocation15_spill]] %s4005_s17  ;;  %p3370_p4 = por %p185_p2, %p184_p1 }
   0xe   : > { %p191_p5 = scmp.eq.s32.totalorder %s2602_s15, 0  ;;  %s174_s20 = ssub.s32 %s3265_s13, %s4005_s17 }
   0xf   : > { %p294_p6 = scmp.eq.s32.totalorder %s2602_s15, 1  ;;  %p175_p7 = scmp.eq.s32.totalorder %s174_s20, 0 }
  0x10   : > { %p3376_p8 = por %p191_p5, %p190_p3  ;;  %p300_p10 = scmp.eq.s32.totalorder %s2603_s16, 1 }
  0x11   : > { %p3380_p9 = por %p294_p6, %p184_p1  ;;  %p3957_p12 = scmp.ge.s32.totalorder %s3269_s14, 2 }
  0x12   : > { %s3385_s23 = scalar_select %p175_p7, %s3257_s11, %s177_s18  }
  0x13   : > { %p3387_p11 = por %p300_p10, %p190_p3  ;;  %353 = sbr.rel (%p3957_p12) target bundleno = 59 (0x3b), region = 36 }
  0x14   : > { %3963 = sst [smem:[#allocation16_spill]] %s3385_s23  ;;  %s3395_s25 = sand.u32 (!%p3957_p12), 1, %s3257_s11  }
  0x15   : > { %s3964_s24 = scalar_select %p3387_p11, 1, 0 }
  0x16   : > { %s2876_s26 = sshll.u32 (!%p3957_p12), %s3265_s13, 11  ;;  %s2611_s27 = sshll.u32 (!%p3957_p12), %s3395_s25, 7 }
  0x17   : > { %3965 = sst [smem:[#allocation17_spill]] %s3964_s24  ;;  %s368_s15 = scalar_lea.hbm (!%p3957_p12), %s3936_s5, %s2876_s26 }
  0x18   : > { %s361_s16 = scalar_lea.vmem [#allocation4], %s2611_s27  ;;  %s358_s20 = scalar_lea.sflag [#allocation5], %s3395_s25 }
  0x19   : > { %s369_s18 = sshll.u32 %s361_s16, 4  ;;  %s3271_s23 = smov [#allocation4]   ;;  %s370_s18 = int_to_ptr.vmem [resolvable:$true] %s369_s18 }
  0x1a   : > { %s3145_s17 = scalar_lea.vmem %s370_s18, 2048  ;;  %s3149_s11 = sshll.u32 %s3271_s23, 4  ;;  %s3150_s11 = int_to_ptr.vmem [resolvable:$false] %s3149_s11 }
  0x1b   : > { %p3146_p13 = scmp.ne.s32.totalorder %s370_s18, %s3145_s17  ;;  %s3151_s24 = scalar_lea.vmem %s3150_s11, 4096 }
  0x1c   : > { %p3152_p2 = scmp.lt.s32.totalorder %s370_s18, %s3150_s11  ;;  %p3153_p3 = scmp.lt.s32.totalorder %s3151_s24, %s3145_s17 }
  0x1d   : > { %p3147_p0 = pnand %p3146_p13, %p3370_p4 }
  0x1e   : > { %p3154_p5 = por %p3153_p3, %p3152_p2 }
  0x1f   : > { %p3148_p1 = pneg %p3147_p0 }
  0x21   : > { %p3155_p6 = pnand %p3154_p5, %p3148_p1 }
  0x23   : > { %3158 = shalt.err (!%p3155_p6)
}
  0x24   : > { %s3272_s28 = smov 256   ;;  %s3273_s26 = smov 16  }
  0x25   : > { %3018 = dma.hbm_to_vmem [thread:$0]  (%p3370_p4), %s368_s15, 2048, %s370_s18, %s358_s20, %s3272_s28, %s3272_s28, %s3273_s26  }
  0x26   : > { %378 = sbr.rel (!%p3370_p4) target bundleno = 44 (0x2c), region = 44  ;;  %s2615_s29 = sshll.u32 (%p3370_p4), %s3265_s13, 1 }
  0x27   : > { %s3016_s27 = smul.u32 (%p3370_p4), 6, %s3395_s25  ;;  %s384_s11 = scalar_lea.vmem (%p3370_p4), %s3937_s6, %s2615_s29 }
  0x28   : > { %v401_v0 = vld [vmem:[%s384_s11] sm:$0x3] (%p3370_p4)  ;;  %v403_v1 = vld [vmem:[%s384_s11 + $0x4] sm:$0x3] (%p3370_p4)  ;;  %v405_v2 = vld [vmem:[%s384_s11 + $0x8] sm:$0x3] (%p3370_p4) }
  0x29   : > { %s382_s17 = scalar_lea.vmem (%p3370_p4), [#allocation7], %s3016_s27 }
  0x2a   : > { %402 = vst [vmem:[%s382_s17] sm:$0x3] (%p3370_p4), %v401_v0  ;;  %404 = vst [vmem:[%s382_s17 + $0x2] sm:$0x3] (%p3370_p4), %v403_v1 }
  0x2b   : > { %406 = vst [vmem:[%s382_s17 + $0x4] sm:$0x3] %v405_v2 }
  0x2c PF: > { %s2616_s24 = sshll.u32 %s3395_s25, 6  ;;  %s2877_s15 = sshll.u32 %s3265_s13, 10 }
  0x2d   : > { %s439_s28 = scalar_lea.hbm %s3938_s7, %s2877_s15  ;;  %s433_s26 = scalar_lea.vmem [#allocation8], %s2616_s24 }
  0x2e   : > { %s440_s29 = sshll.u32 %s433_s26, 4  ;;  %s430_s23 = scalar_lea.sflag [#allocation9], %s3395_s25  ;;  %s441_s29 = int_to_ptr.vmem [resolvable:$true] %s440_s29 }
  0x2f   : > { %s3171_s27 = scalar_lea.vmem %s441_s29, 1024  ;;  %s3274_s16 = smov [#allocation8]  }
  0x30   : > { %p3172_p7 = scmp.ne.s32.totalorder %s441_s29, %s3171_s27  ;;  %s3175_s11 = sshll.u32 %s3274_s16, 4  ;;  %s3176_s11 = int_to_ptr.vmem [resolvable:$false] %s3175_s11 }
  0x31   : > { %s3177_s17 = scalar_lea.vmem %s3176_s11, 2048  ;;  %p3178_p0 = scmp.lt.s32.totalorder %s441_s29, %s3176_s11 }
  0x32   : > { %p3173_p10 = pnand %p3172_p7, %p3370_p4  ;;  %p3179_p1 = scmp.lt.s32.totalorder %s3177_s17, %s3171_s27 }
  0x34   : > { %p3174_p13 = pneg %p3173_p10  ;;  %p3180_p2 = por %p3179_p1, %p3178_p0 }
  0x36   : > { %p3181_p3 = pnand %p3180_p2, %p3174_p13 }
  0x38   : > { %3184 = shalt.err (!%p3181_p3)
}
  0x39   : > { %s3275_s18 = smov 128   ;;  %s3276_s24 = smov 8  }
  0x3a   : > { %3019 = dma.hbm_to_vmem [thread:$0]  (%p3370_p4), %s439_s28, 1024, %s441_s29, %s430_s23, %s3275_s18, %s3275_s18, %s3276_s24  }
  0x3b PF: > { %p2619_p5 = scmp.ge.s32.totalorder %s3269_s14, 1  ;;  %p456_p6 = scmp.lt.s32.totalorder %s3269_s14, 3 }
  0x3d   : > { %p457_p7 = pnand %p2619_p5, %p456_p6 }
  0x3f   : > { %460 = sbr.rel (%p457_p7) target bundleno = 502 (0x1f6), region = 86 }
  0x44   : > { %s3427_s25 = sand.u32 1, %s3253_s10  }
  0x45   : > { %s2620_s15 = sshll.u32 %s3427_s25, 7  ;;  %s463_s20 = scalar_lea.sflag [#allocation5], %s3427_s25 }
  0x46   : > { %s3431_s26 = scalar_lea.vmem [#allocation4], %s2620_s15 }
  0x47   : > { %3236 = dma.done.wait (%p3376_p8), %s463_s20, 2048  }
  0x48   : > { %3238 = vsyncadd (%p3376_p8), %s463_s20, 4294965248  ;;  %s3017_s19 = smul.u32 6, %s3427_s25  ;;  %s2621_s28 = sshll.u32 %s3427_s25, 6 }
  0x49   : > { %s479_s23 = scalar_lea.sflag [#allocation9], %s3427_s25  ;;  %s3442_s27 = scalar_lea.vmem [#allocation8], %s2621_s28 }
  0x4a   : > { %s3439_s29 = scalar_lea.vmem [#allocation7], %s3017_s19 }
  0x4b   : > { %3240 = dma.done.wait (%p3376_p8), %s479_s23, 1024  }
  0x4c   : > { %3242 = vsyncadd (%p3376_p8), %s479_s23, 4294966272  ;;  %v1700_v3 = vld [vmem:[%s3442_s27 + $0x38] sm:$0xff]  ;;  %v3451_v5 = vld [vmem:[%s3442_s27 + $0x30] sm:$0xff]  ;;  %s2623_s24 = sshll.u32 %s3261_s12, 1  ;;  %s2622_s19 = sshll.u32 %s3427_s25, 3 }
  0x4d   : > { %v1696_v4 = vld [vmem:[%s3442_s27 + $0x18] sm:$0xff]  ;;  %v1716_v6 = vunpack.c.l.s8.bf16 %v1700_v3  ;;  %v1717_v7 = vunpack.c.h.s8.bf16 %v1700_v3  ;;  %v3454_v10 = vld [vmem:[%s3442_s27 + $0x10] sm:$0xff]  ;;  %v3457_v11 = vld [vmem:[%s3431_s26 + $0x70] sm:$0xff]  ;;  %v1715_v13 = vunpack.c.h.s8.bf16 %v3451_v5  ;;  %p578_p4 = scmp.lt.s32.totalorder %s2623_s24, 3  ;;  %s551_s28 = scalar_lea.vmem [#allocation10], %s2622_s19 }
  0x4e   : > { %v1708_v8 = vunpack.c.l.s8.bf16 %v1696_v4  ;;  %v1709_v9 = vunpack.c.h.s8.bf16 %v1696_v4  ;;  %v3460_v12 = vld [vmem:[%s3431_s26 + $0x78] sm:$0xff]  ;;  %v1707_v14 = vunpack.c.h.s8.bf16 %v3454_v10  ;;  %v664_v15 = vunpack.c.2.s8 %v3457_v11  ;;  %v3467_v17 = vld [vmem:[%s3431_s26 + $0x30] sm:$0xff]  ;;  %s2396_s23 = sshll.u32 %s551_s28, 4  ;;  %s2380_s11 = scalar_lea.sflag [#allocation6], %s3427_s25  ;;  %s2397_s23 = int_to_ptr.vmem [resolvable:$true] %s2396_s23 }
  0x4f   : > { %v665_v16 = vunpack.c.2.s8 %v3460_v12  ;;  %v3470_v18 = vld [vmem:[%s3431_s26 + $0x38] sm:$0xff]  ;;  %2944 = vmatprep.subr.bf16.mxu0 %v1717_v7  ;;  %v666_v19 = vunpack.c.3.s8 %v3457_v11  ;;  %v667_v20 = vunpack.c.3.s8 %v3460_v12  ;;  %v632_v21 = vunpack.c.2.s8 %v3467_v17  ;;  %s4007_s24 = smov (!%p578_p4, %s2623_s24), 3  ;;  %s3185_s17 = scalar_lea.vmem %s2397_s23, 128 }
  0x50   : > { %v633_v22 = vunpack.c.2.s8 %v3470_v18  ;;  %2945 = vmatpush3.bf16.xpose.msra.mxu0 %v1709_v9  ;;  %v3476_v23 = vand.u32 255, %v664_v15  ;;  %v634_v25 = vunpack.c.3.s8 %v3467_v17  ;;  %v635_v26 = vunpack.c.3.s8 %v3470_v18  ;;  %p3186_p8 = scmp.ne.s32.totalorder %s2397_s23, %s3185_s17  ;;  %s3278_s18 = smov [#allocation10]  }
  0x51   : > { %v3478_v24 = vand.u32 255, %v665_v16  ;;  %2946 = vmatprep.subr.bf16.mxu0 %v1716_v6  ;;  %v3482_v27 = vand.u32 255, %v666_v19  ;;  %v3484_v28 = vand.u32 255, %v667_v20  ;;  %v696_v29 = vand.u32 255, %v632_v21 }
  0x52   : > { %v697_v30 = vand.u32 255, %v633_v22  ;;  %v792_v31 = vand.u32 15, %v3476_v23  ;;  %v698_v33 = vand.u32 255, %v634_v25  ;;  %v699_v34 = vand.u32 255, %v635_v26  ;;  %p3187_p10 = pnand %p3186_p8, %p3380_p9 }
  0x53   : > { %v793_v32 = vand.u32 15, %v3478_v24  ;;  %v794_v35 = vand.u32 15, %v3482_v27  ;;  %v795_v36 = vand.u32 15, %v3484_v28  ;;  %v760_v37 = vand.u32 15, %v696_v29 }
  0x54   : > { %v761_v38 = vand.u32 15, %v697_v30  ;;  %v856_v39 = vxor.u32 8, %v792_v31  ;;  %v762_v41 = vand.u32 15, %v698_v33  ;;  %v763_v42 = vand.u32 15, %v699_v34  ;;  %p3188_p13 = pneg %p3187_p10 }
  0x55   : > { %v857_v40 = vxor.u32 8, %v793_v32  ;;  %v858_v43 = vxor.u32 8, %v794_v35  ;;  %v859_v44 = vxor.u32 8, %v795_v36  ;;  %v824_v45 = vxor.u32 8, %v760_v37  ;;  %v3519_v35 = vld [vmem:[%s3442_s27 + $0x28] sm:$0xff] }
  0x56   : > { %v825_v46 = vxor.u32 8, %v761_v38  ;;  %v2684_v47 = vadd.s32 4294967288, %v856_v39  ;;  %v826_v49 = vxor.u32 8, %v762_v41  ;;  %v827_v50 = vxor.u32 8, %v763_v42  ;;  %v3522_v36 = vld [vmem:[%s3442_s27 + $0x8] sm:$0xff]  ;;  %v3535_v39 = vld [vmem:[%s3431_s26 + $0x68] sm:$0xff] }
  0x57   : > { %v2685_v48 = vadd.s32 4294967288, %v857_v40  ;;  %v2686_v51 = vadd.s32 4294967288, %v858_v43  ;;  %v2687_v52 = vadd.s32 4294967288, %v859_v44  ;;  %v2652_v53 = vadd.s32 4294967288, %v824_v45 }
  0x58   : > { %v2653_v54 = vadd.s32 4294967288, %v825_v46  ;;  %2947 = vmatpush3.bf16.xpose.msra.mxu0 %v1708_v8  ;;  %v984_v55 = vcvt.s32.f32 %v2684_v47  ;;  %v2654_v57 = vadd.s32 4294967288, %v826_v49  ;;  %v2655_v58 = vadd.s32 4294967288, %v827_v50 }
  0x59   : > { %v985_v56 = vcvt.s32.f32 %v2685_v48  ;;  %2948 = vmatprep.subr.bf16.mxu0 %v1715_v13  ;;  %v986_v59 = vcvt.s32.f32 %v2686_v51  ;;  %v987_v60 = vcvt.s32.f32 %v2687_v52  ;;  %v952_v61 = vcvt.s32.f32 %v2652_v53 }
  0x5a   : > { %v953_v62 = vcvt.s32.f32 %v2653_v54  ;;  %v954_v0 = vcvt.s32.f32 %v2654_v57  ;;  %v955_v1 = vcvt.s32.f32 %v2655_v58  ;;  %v1240_v2 = vshra.s32 %v696_v29, 4 }
  0x5b   : > { %v2908_v63 = vpack.c.bf16 %v985_v56, %v984_v55  ;;  %v2909_v3 = vpack.c.bf16 %v987_v60, %v986_v59  ;;  %v1241_v6 = vshra.s32 %v697_v30, 4  ;;  %v1242_v7 = vshra.s32 %v698_v33, 4 }
  0x5c   : > { %v2892_v4 = vpack.c.bf16 %v953_v62, %v952_v61  ;;  %v2893_v9 = vpack.c.bf16 %v955_v1, %v954_v0  ;;  %v1243_v8 = vshra.s32 %v699_v34, 4  ;;  %v3490_v15 = vxor.u32 8, %v1240_v2  ;;  %v1781_v61 = vld [vmem:[%s3931_s0] sm:$0xff] }
  0x5d   : > { %1210 = vst [vmem:[#allocation2 + $0xf0] sm:$0xff] %v2908_v63  ;;  %v1714_v16 = vunpack.c.l.s8.bf16 %v3451_v5  ;;  %1211 = vst [vmem:[#allocation2 + $0xf8] sm:$0xff] %v2909_v3  ;;  %v3493_v13 = vxor.u32 8, %v1241_v6  ;;  %v3495_v19 = vxor.u32 8, %v1242_v7  ;;  %v1706_v20 = vunpack.c.l.s8.bf16 %v3454_v10  ;;  %2978 = vmatprep.mubr.bf16.mxu1 %v1781_v61 }
  0x5e   : > { %1194 = vst [vmem:[#allocation2 + $0x70] sm:$0xff] %v2892_v4  ;;  %v660_v21 = vunpack.c.0.s8 %v3457_v11  ;;  %1195 = vst [vmem:[#allocation2 + $0x78] sm:$0xff] %v2893_v9  ;;  %v3499_v22 = vxor.u32 8, %v1243_v8  ;;  %v661_v25 = vunpack.c.0.s8 %v3460_v12  ;;  %v662_v26 = vunpack.c.1.s8 %v3457_v11 }
  0x5f   : > { %v663_v5 = vunpack.c.1.s8 %v3460_v12  ;;  %v628_v30 = vunpack.c.0.s8 %v3467_v17  ;;  %v629_v31 = vunpack.c.0.s8 %v3470_v18  ;;  %v630_v32 = vunpack.c.1.s8 %v3467_v17 }
  0x60   : > { %v3504_v29 = vand.u32 255, %v660_v21  ;;  %2949 = vmatpush3.bf16.xpose.msra.mxu0 %v1707_v14  ;;  %v3511_v33 = vand.u32 255, %v661_v25  ;;  %v3513_v34 = vand.u32 255, %v662_v26  ;;  %v631_v12 = vunpack.c.1.s8 %v3470_v18  ;;  %v3532_v14 = vld [vmem:[%s3431_s26 + $0x60] sm:$0xff] }
  0x61   : > { %v3515_v11 = vand.u32 255, %v663_v5  ;;  %2950 = vmatprep.subr.bf16.mxu0 %v1714_v16  ;;  %v3525_v38 = vand.u32 255, %v628_v30  ;;  %v3527_v17 = vand.u32 255, %v629_v31  ;;  %v3529_v10 = vand.u32 255, %v630_v32  ;;  %v3558_v30 = vld [vmem:[%s3431_s26 + $0x20] sm:$0xff] }
  0x62   : > { %v788_v37 = vand.u32 15, %v3504_v29  ;;  %v789_v40 = vand.u32 15, %v3511_v33  ;;  %v790_v18 = vand.u32 15, %v3513_v34  ;;  %v3540_v42 = vand.u32 255, %v631_v12 }
  0x63   : > { %v791_v41 = vand.u32 15, %v3515_v11  ;;  %v756_v44 = vand.u32 15, %v3525_v38  ;;  %v757_v45 = vand.u32 15, %v3527_v17  ;;  %v758_v46 = vand.u32 15, %v3529_v10 }
  0x64   : > { %v852_v43 = vxor.u32 8, %v788_v37  ;;  %v3084_v47 = vld [vmem:[#allocation2 + $0xf0] ss:$8 sps:$4 sm:$0xff]   ;;  %v1713_v48 = vunpack.c.h.s8.bf16 %v3519_v35  ;;  %v1705_v49 = vunpack.c.h.s8.bf16 %v3522_v36  ;;  %v656_v50 = vunpack.c.2.s8 %v3532_v14  ;;  %v3563_v37 = vld [vmem:[%s3431_s26 + $0x28] sm:$0xff] }
  0x65   : > { %v657_v51 = vunpack.c.2.s8 %v3535_v39  ;;  %v3085_v52 = vld [vmem:[#allocation2 + $0x70] ss:$8 sps:$4 sm:$0xff]   ;;  %v853_v53 = vxor.u32 8, %v789_v40  ;;  %v854_v54 = vxor.u32 8, %v790_v18  ;;  %v658_v55 = vunpack.c.3.s8 %v3532_v14  ;;  %2962 = vmatprep.subr.bf16.mxu1 %v3084_v47 }
  0x66   : > { %v659_v56 = vunpack.c.3.s8 %v3535_v39  ;;  %v855_v57 = vxor.u32 8, %v791_v41  ;;  %v2680_v58 = vadd.s32 4294967288, %v852_v43  ;;  %v759_v59 = vand.u32 15, %v3540_v42  ;;  %2963 = vmatpush3.bf16.xpose.msra.mxu1 %v3085_v52 }
  0x67   : > { %v820_v60 = vxor.u32 8, %v756_v44  ;;  %v2681_v62 = vadd.s32 4294967288, %v853_v53  ;;  %v2682_v63 = vadd.s32 4294967288, %v854_v54  ;;  %v821_v0 = vxor.u32 8, %v757_v45 }
  0x68   : > { %v822_v1 = vxor.u32 8, %v758_v46  ;;  %2951 = vmatpush3.bf16.xpose.msra.mxu0 %v1706_v20  ;;  %v2683_v2 = vadd.s32 4294967288, %v855_v57  ;;  %v980_v3 = vcvt.s32.f32 %v2680_v58  ;;  %v823_v4 = vxor.u32 8, %v759_v59 }
  0x69   : > { %v2648_v6 = vadd.s32 4294967288, %v820_v60  ;;  %v981_v7 = vcvt.s32.f32 %v2681_v62  ;;  %v982_v9 = vcvt.s32.f32 %v2682_v63  ;;  %v2649_v8 = vadd.s32 4294967288, %v821_v0  ;;  %2952 = vmatprep.subr.bf16.mxu0 %v1713_v48 }
  0x6a   : > { %v2650_v16 = vadd.s32 4294967288, %v822_v1  ;;  %v983_v21 = vcvt.s32.f32 %v2683_v2  ;;  %v2651_v25 = vadd.s32 4294967288, %v823_v4  ;;  %v3555_v5 = vand.u32 255, %v656_v50 }
  0x6b   : > { %v948_v26 = vcvt.s32.f32 %v2648_v6  ;;  %v2906_v31 = vpack.c.bf16 %v981_v7, %v980_v3  ;;  %v949_v32 = vcvt.s32.f32 %v2649_v8  ;;  %v3560_v12 = vand.u32 255, %v657_v51 }
  0x6c   : > { %v950_v20 = vcvt.s32.f32 %v2650_v16  ;;  %v2907_v40 = vpack.c.bf16 %v983_v21, %v982_v9  ;;  %v951_v18 = vcvt.s32.f32 %v2651_v25  ;;  %v3565_v41 = vand.u32 255, %v658_v55 }
  0x6d   : > { %v3567_v43 = vand.u32 255, %v659_v56  ;;  %1208 = vst [vmem:[#allocation2 + $0xe0] sm:$0xff] %v2906_v31  ;;  %v2890_v44 = vpack.c.bf16 %v949_v32, %v948_v26  ;;  %v784_v45 = vand.u32 15, %v3555_v5  ;;  %v785_v46 = vand.u32 15, %v3560_v12 }
  0x6e   : > { %v624_v47 = vunpack.c.2.s8 %v3558_v30  ;;  %1209 = vst [vmem:[#allocation2 + $0xe8] sm:$0xff] %v2907_v40  ;;  %v2891_v48 = vpack.c.bf16 %v951_v18, %v950_v20  ;;  %v786_v50 = vand.u32 15, %v3565_v41  ;;  %v625_v52 = vunpack.c.2.s8 %v3563_v37 }
  0x6f   : > { %v787_v51 = vand.u32 15, %v3567_v43  ;;  %1192 = vst [vmem:[#allocation2 + $0x60] sm:$0xff] %v2890_v44  ;;  %v848_v53 = vxor.u32 8, %v784_v45  ;;  %v849_v54 = vxor.u32 8, %v785_v46  ;;  %v626_v55 = vunpack.c.3.s8 %v3558_v30 }
  0x70   : > { %v627_v56 = vunpack.c.3.s8 %v3563_v37  ;;  %1193 = vst [vmem:[#allocation2 + $0x68] sm:$0xff] %v2891_v48  ;;  %2953 = vmatpush3.bf16.xpose.msra.mxu0 %v1705_v49  ;;  %v850_v57 = vxor.u32 8, %v786_v50  ;;  %v3577_v59 = vand.u32 255, %v624_v47  ;;  %v3579_v60 = vand.u32 255, %v625_v52 }
  0x71   : > { %v851_v58 = vxor.u32 8, %v787_v51  ;;  %v2676_v61 = vadd.s32 4294967288, %v848_v53  ;;  %v2677_v62 = vadd.s32 4294967288, %v849_v54  ;;  %v3581_v63 = vand.u32 255, %v626_v55 }
  0x72   : > { %v3583_v0 = vand.u32 255, %v627_v56  ;;  %v2678_v1 = vadd.s32 4294967288, %v850_v57  ;;  %v752_v3 = vand.u32 15, %v3577_v59  ;;  %v753_v4 = vand.u32 15, %v3579_v60 }
  0x73   : > { %v2679_v2 = vadd.s32 4294967288, %v851_v58  ;;  %v976_v6 = vcvt.s32.f32 %v2676_v61  ;;  %v977_v49 = vcvt.s32.f32 %v2677_v62  ;;  %v754_v7 = vand.u32 15, %v3581_v63 }
  0x74   : > { %v755_v9 = vand.u32 15, %v3583_v0  ;;  %v978_v8 = vcvt.s32.f32 %v2678_v1  ;;  %v816_v21 = vxor.u32 8, %v752_v3  ;;  %v817_v25 = vxor.u32 8, %v753_v4 }
  0x75   : > { %v979_v16 = vcvt.s32.f32 %v2679_v2  ;;  %v3086_v26 = vld [vmem:[#allocation2 + $0xe0] ss:$8 sps:$4 sm:$0xff]   ;;  %v2904_v31 = vpack.c.bf16 %v977_v49, %v976_v6  ;;  %v818_v32 = vxor.u32 8, %v754_v7  ;;  %v1712_v40 = vunpack.c.l.s8.bf16 %v3519_v35 }
  0x76   : > { %v819_v20 = vxor.u32 8, %v755_v9  ;;  %v2644_v44 = vadd.s32 4294967288, %v816_v21  ;;  %v2645_v45 = vadd.s32 4294967288, %v817_v25  ;;  %v1704_v46 = vunpack.c.l.s8.bf16 %v3522_v36  ;;  %2964 = vmatprep.subr.bf16.mxu1 %v3086_v26 }
  0x77   : > { %v2905_v18 = vpack.c.bf16 %v979_v16, %v978_v8  ;;  %v3087_v47 = vld [vmem:[#allocation2 + $0x60] ss:$8 sps:$4 sm:$0xff]   ;;  %1206 = vst [vmem:[#allocation2 + $0xd0] sm:$0xff] %v2904_v31  ;;  %v2646_v48 = vadd.s32 4294967288, %v818_v32  ;;  %2954 = vmatprep.subr.bf16.mxu0 %v1712_v40  ;;  %v652_v51 = vunpack.c.0.s8 %v3532_v14  ;;  %v653_v52 = vunpack.c.0.s8 %v3535_v39  ;;  %v3612_v8 = vld [vmem:[%s3442_s27 + $0x20] sm:$0xff] }
  0x78   : > { %v2647_v50 = vadd.s32 4294967288, %v819_v20  ;;  %v944_v53 = vcvt.s32.f32 %v2644_v44  ;;  %v945_v54 = vcvt.s32.f32 %v2645_v45  ;;  %2955 = vmatpush3.bf16.xpose.msra.mxu0 %v1704_v46  ;;  %v654_v35 = vunpack.c.1.s8 %v3532_v14  ;;  %2965 = vmatpush3.bf16.xpose.msra.mxu1 %v3087_v47  ;;  %v3615_v16 = vld [vmem:[%s3442_s27] sm:$0xff] }
  0x79   : > { %1207 = vst [vmem:[#allocation2 + $0xd8] sm:$0xff] %v2905_v18  ;;  %v655_v55 = vunpack.c.1.s8 %v3535_v39  ;;  %v946_v36 = vcvt.s32.f32 %v2646_v48  ;;  %v3595_v57 = vand.u32 255, %v652_v51  ;;  %v3597_v58 = vand.u32 255, %v653_v52 }
  0x7a   : > { %v947_v56 = vcvt.s32.f32 %v2647_v50  ;;  %v2888_v61 = vpack.c.bf16 %v945_v54, %v944_v53  ;;  %v3599_v62 = vand.u32 255, %v654_v35  ;;  %v620_v2 = vunpack.c.0.s8 %v3558_v30 }
  0x7b   : > { %v3601_v1 = vand.u32 255, %v655_v55  ;;  %v780_v14 = vand.u32 15, %v3595_v57  ;;  %v781_v39 = vand.u32 15, %v3597_v58  ;;  %v621_v4 = vunpack.c.0.s8 %v3563_v37 }
  0x7c   : > { %v2889_v3 = vpack.c.bf16 %v947_v56, %v946_v36  ;;  %1190 = vst [vmem:[#allocation2 + $0x50] sm:$0xff] %v2888_v61  ;;  %v782_v6 = vand.u32 15, %v3599_v62  ;;  %v622_v7 = vunpack.c.1.s8 %v3558_v30  ;;  %v623_v9 = vunpack.c.1.s8 %v3563_v37  ;;  %v3626_v30 = vld [vmem:[%s3431_s26 + $0x50] sm:$0xff]  ;;  %v3635_v36 = vld [vmem:[%s3431_s26 + $0x58] sm:$0xff] }
  0x7d   : > { %v783_v49 = vand.u32 15, %v3601_v1  ;;  %v844_v21 = vxor.u32 8, %v780_v14  ;;  %v845_v25 = vxor.u32 8, %v781_v39  ;;  %v3617_v26 = vand.u32 255, %v620_v2 }
  0x7e   : > { %1191 = vst [vmem:[#allocation2 + $0x58] sm:$0xff] %v2889_v3  ;;  %v3619_v31 = vand.u32 255, %v621_v4  ;;  %v846_v32 = vxor.u32 8, %v782_v6  ;;  %v3621_v40 = vand.u32 255, %v622_v7  ;;  %v3623_v18 = vand.u32 255, %v623_v9 }
  0x7f   : > { %v847_v20 = vxor.u32 8, %v783_v49  ;;  %v2672_v44 = vadd.s32 4294967288, %v844_v21  ;;  %v2673_v45 = vadd.s32 4294967288, %v845_v25  ;;  %v1711_v46 = vunpack.c.h.s8.bf16 %v3612_v8 }
  0x80   : > { %v3088_v37 = vld [vmem:[#allocation2 + $0xd0] ss:$8 sps:$4 sm:$0xff]   ;;  %v1703_v47 = vunpack.c.h.s8.bf16 %v3615_v16  ;;  %v2674_v48 = vadd.s32 4294967288, %v846_v32  ;;  %v748_v51 = vand.u32 15, %v3617_v26  ;;  %v749_v52 = vand.u32 15, %v3619_v31 }
  0x81   : > { %v2675_v50 = vadd.s32 4294967288, %v847_v20  ;;  %2966 = vmatprep.subr.bf16.mxu1 %v3088_v37  ;;  %v972_v53 = vcvt.s32.f32 %v2672_v44  ;;  %v973_v54 = vcvt.s32.f32 %v2673_v45  ;;  %v750_v35 = vand.u32 15, %v3621_v40  ;;  %2956 = vmatprep.subr.bf16.mxu0 %v1711_v46  ;;  %v3642_v45 = vld [vmem:[%s3431_s26 + $0x10] sm:$0xff] }
  0x82   : > { %v751_v55 = vand.u32 15, %v3623_v18  ;;  %v974_v56 = vcvt.s32.f32 %v2674_v48  ;;  %v812_v2 = vxor.u32 8, %v748_v51  ;;  %v813_v3 = vxor.u32 8, %v749_v52  ;;  %2957 = vmatpush3.bf16.xpose.msra.mxu0 %v1703_v47  ;;  %v3649_v51 = vld [vmem:[%s3431_s26 + $0x18] sm:$0xff] }
  0x83   : > { %v975_v61 = vcvt.s32.f32 %v2675_v50  ;;  %v2902_v14 = vpack.c.bf16 %v973_v54, %v972_v53  ;;  %v814_v39 = vxor.u32 8, %v750_v35  ;;  %v648_v6 = vunpack.c.2.s8 %v3626_v30 }
  0x84   : > { %v815_v4 = vxor.u32 8, %v751_v55  ;;  %v2640_v9 = vadd.s32 4294967288, %v812_v2  ;;  %v2641_v21 = vadd.s32 4294967288, %v813_v3  ;;  %v649_v25 = vunpack.c.2.s8 %v3635_v36 }
  0x85   : > { %v3089_v49 = vld [vmem:[#allocation2 + $0x50] ss:$8 sps:$4 sm:$0xff]   ;;  %v2903_v7 = vpack.c.bf16 %v975_v61, %v974_v56  ;;  %1204 = vst [vmem:[#allocation2 + $0xc0] sm:$0xff] %v2902_v14  ;;  %v2642_v32 = vadd.s32 4294967288, %v814_v39  ;;  %v650_v37 = vunpack.c.3.s8 %v3626_v30  ;;  %v651_v44 = vunpack.c.3.s8 %v3635_v36 }
  0x86   : > { %v2643_v20 = vadd.s32 4294967288, %v815_v4  ;;  %2967 = vmatpush3.bf16.xpose.msra.mxu1 %v3089_v49  ;;  %v940_v46 = vcvt.s32.f32 %v2640_v9  ;;  %v941_v47 = vcvt.s32.f32 %v2641_v21  ;;  %v3644_v48 = vand.u32 255, %v648_v6 }
  0x87   : > { %1205 = vst [vmem:[#allocation2 + $0xc8] sm:$0xff] %v2903_v7  ;;  %v3646_v50 = vand.u32 255, %v649_v25  ;;  %v942_v52 = vcvt.s32.f32 %v2642_v32  ;;  %v3651_v54 = vand.u32 255, %v650_v37  ;;  %v3653_v35 = vand.u32 255, %v651_v44 }
  0x88   : > { %v943_v53 = vcvt.s32.f32 %v2643_v20  ;;  %v2886_v55 = vpack.c.bf16 %v941_v47, %v940_v46  ;;  %v776_v56 = vand.u32 15, %v3644_v48  ;;  %v616_v2 = vunpack.c.2.s8 %v3642_v45 }
  0x89   : > { %v777_v61 = vand.u32 15, %v3646_v50  ;;  %v778_v14 = vand.u32 15, %v3651_v54  ;;  %v779_v39 = vand.u32 15, %v3653_v35  ;;  %v617_v4 = vunpack.c.2.s8 %v3649_v51 }
  0x8a   : > { %v2887_v3 = vpack.c.bf16 %v943_v53, %v942_v52  ;;  %1188 = vst [vmem:[#allocation2 + $0x40] sm:$0xff] %v2886_v55  ;;  %v840_v6 = vxor.u32 8, %v776_v56  ;;  %v618_v7 = vunpack.c.3.s8 %v3642_v45  ;;  %v619_v9 = vunpack.c.3.s8 %v3649_v51 }
  0x8b   : > { %v841_v49 = vxor.u32 8, %v777_v61  ;;  %v842_v21 = vxor.u32 8, %v778_v14  ;;  %v843_v25 = vxor.u32 8, %v779_v39  ;;  %v3663_v32 = vand.u32 255, %v616_v2 }
  0x8c   : > { %1189 = vst [vmem:[#allocation2 + $0x48] sm:$0xff] %v2887_v3  ;;  %v3665_v20 = vand.u32 255, %v617_v4  ;;  %v2668_v37 = vadd.s32 4294967288, %v840_v6  ;;  %v3667_v46 = vand.u32 255, %v618_v7  ;;  %v3669_v47 = vand.u32 255, %v619_v9 }
  0x8d   : > { %3966 = vst [vmem:[#allocation18_spill] sm:$0xff] %v3663_v32  ;;  %v2669_v44 = vadd.s32 4294967288, %v841_v49  ;;  %v2670_v53 = vadd.s32 4294967288, %v842_v21  ;;  %v2671_v55 = vadd.s32 4294967288, %v843_v25  ;;  %v1710_v56 = vunpack.c.l.s8.bf16 %v3612_v8 }
  0x8e   : > { %3967 = vst [vmem:[#allocation19_spill] sm:$0xff] %v3665_v20  ;;  %3968 = vst [vmem:[#allocation20_spill] sm:$0xff] %v3669_v47  ;;  %v3090_v52 = vld [vmem:[#allocation2 + $0xc0] ss:$8 sps:$4 sm:$0xff]   ;;  %v1702_v61 = vunpack.c.l.s8.bf16 %v3615_v16  ;;  %v968_v3 = vcvt.s32.f32 %v2668_v37  ;;  %v744_v2 = vand.u32 15, %v3663_v32  ;;  %v745_v39 = vand.u32 15, %v3665_v20 }
  0x8f   : > { %v969_v14 = vcvt.s32.f32 %v2669_v44  ;;  %2968 = vmatprep.subr.bf16.mxu1 %v3090_v52  ;;  %v970_v4 = vcvt.s32.f32 %v2670_v53  ;;  %v971_v6 = vcvt.s32.f32 %v2671_v55  ;;  %v746_v49 = vand.u32 15, %v3667_v46  ;;  %2958 = vmatprep.subr.bf16.mxu0 %v1710_v56 }
  0x90   : > { %v747_v7 = vand.u32 15, %v3669_v47  ;;  %v808_v21 = vxor.u32 8, %v744_v2  ;;  %v809_v25 = vxor.u32 8, %v745_v39  ;;  %2959 = vmatpush3.bf16.xpose.msra.mxu0 %v1702_v61  ;;  %v644_v8 = vunpack.c.0.s8 %v3626_v30 }
  0x91   : > { %v2900_v9 = vpack.c.bf16 %v969_v14, %v968_v3  ;;  %v2901_v16 = vpack.c.bf16 %v971_v6, %v970_v4  ;;  %v810_v37 = vxor.u32 8, %v746_v49  ;;  %v645_v32 = vunpack.c.0.s8 %v3635_v36 }
  0x92   : > { %v811_v44 = vxor.u32 8, %v747_v7  ;;  %v2636_v52 = vadd.s32 4294967288, %v808_v21  ;;  %v2637_v53 = vadd.s32 4294967288, %v809_v25  ;;  %v646_v55 = vunpack.c.1.s8 %v3626_v30 }
  0x93   : > { %v3091_v20 = vld [vmem:[#allocation2 + $0x40] ss:$8 sps:$4 sm:$0xff]   ;;  %1202 = vst [vmem:[#allocation2 + $0xb0] sm:$0xff] %v2900_v9  ;;  %v647_v47 = vunpack.c.1.s8 %v3635_v36  ;;  %1203 = vst [vmem:[#allocation2 + $0xb8] sm:$0xff] %v2901_v16  ;;  %v2638_v56 = vadd.s32 4294967288, %v810_v37  ;;  %v3681_v14 = vand.u32 255, %v644_v8  ;;  %v613_v37 = vunpack.c.0.s8 %v3649_v51 }
  0x94   : > { %v2639_v3 = vadd.s32 4294967288, %v811_v44  ;;  %v3683_v61 = vand.u32 255, %v645_v32  ;;  %2969 = vmatpush3.bf16.xpose.msra.mxu1 %v3091_v20  ;;  %v936_v2 = vcvt.s32.f32 %v2636_v52  ;;  %v937_v39 = vcvt.s32.f32 %v2637_v53  ;;  %v3699_v44 = vld [vmem:[%s3431_s26 + $0x40] sm:$0xff] }
  0x95   : > { %v3685_v4 = vand.u32 255, %v646_v55  ;;  %v3687_v6 = vand.u32 255, %v647_v47  ;;  %v938_v49 = vcvt.s32.f32 %v2638_v56  ;;  %v772_v30 = vand.u32 15, %v3681_v14  ;;  %v1692_v47 = vld [vmem:[%s3934_s3] sm:$0x3] }
  0x96   : > { %v939_v7 = vcvt.s32.f32 %v2639_v3  ;;  %v773_v36 = vand.u32 15, %v3683_v61  ;;  %v2884_v9 = vpack.c.bf16 %v937_v39, %v936_v2  ;;  %v612_v20 = vunpack.c.0.s8 %v3642_v45 }
  0x97   : > { %3969 = vst [vmem:[#allocation21_spill] sm:$0xff] %v3685_v4  ;;  %3970 = vst [vmem:[#allocation22_spill] sm:$0xff] %v3687_v6  ;;  %v774_v21 = vand.u32 15, %v3685_v4  ;;  %v775_v32 = vand.u32 15, %v3687_v6  ;;  %v836_v8 = vxor.u32 8, %v772_v30  ;;  %v614_v55 = vunpack.c.1.s8 %v3642_v45 }
  0x98   : > { %v2885_v25 = vpack.c.bf16 %v939_v7, %v938_v49  ;;  %v837_v16 = vxor.u32 8, %v773_v36  ;;  %1186 = vst [vmem:[#allocation2 + $0x30] sm:$0xff] %v2884_v9  ;;  %v615_v56 = vunpack.c.1.s8 %v3649_v51  ;;  %v3703_v39 = vand.u32 255, %v612_v20  ;;  %v1782_v7 = vld [vmem:[%s3932_s1] sm:$0xff] }
  0x99   : > { %v838_v52 = vxor.u32 8, %v774_v21  ;;  %v839_v53 = vxor.u32 8, %v775_v32  ;;  %v2664_v3 = vadd.s32 4294967288, %v836_v8  ;;  %v3705_v49 = vand.u32 255, %v613_v37 }
  0x9a   : > { %1187 = vst [vmem:[#allocation2 + $0x38] sm:$0xff] %v2885_v25  ;;  %v2665_v2 = vadd.s32 4294967288, %v837_v16  ;;  %3971 = vst [vmem:[#allocation23_spill] sm:$0xff] %v3703_v39  ;;  %v3092_v30 = vld [vmem:[#allocation2 + $0xb0] ss:$8 sps:$4 sm:$0xff]   ;;  %v1701_v21 = vunpack.c.l.s8.bf16 %v1692_v47  ;;  %v3711_v25 = vand.u32 255, %v614_v55 }
  0x9b   : > { %3972 = vst [vmem:[#allocation24_spill] sm:$0xff] %v3705_v49  ;;  %v2666_v36 = vadd.s32 4294967288, %v838_v52  ;;  %v2667_v9 = vadd.s32 4294967288, %v839_v53  ;;  %v964_v45 = vcvt.s32.f32 %v2664_v3  ;;  %v3713_v8 = vand.u32 255, %v615_v56  ;;  %2970 = vmatprep.subr.bf16.mxu1 %v3092_v30  ;;  %v3721_v55 = vld [vmem:[%s3431_s26 + $0x48] sm:$0xff] }
  0x9c   : > { %v965_v51 = vcvt.s32.f32 %v2665_v2  ;;  %3973 = vst [vmem:[#allocation25_spill] sm:$0xff] %v3711_v25  ;;  %v740_v37 = vand.u32 15, %v3703_v39  ;;  %v741_v6 = vand.u32 15, %v3705_v49  ;;  %2960 = vmatprep.mubr.bf16.mxu0 %v1701_v21  ;;  %v742_v47 = vand.u32 15, %v3711_v25 }
  0x9d   : > { %3974 = vst [vmem:[#allocation26_spill] sm:$0xff] %v3713_v8  ;;  %v966_v20 = vcvt.s32.f32 %v2666_v36  ;;  %v967_v16 = vcvt.s32.f32 %v2667_v9  ;;  %v743_v53 = vand.u32 15, %v3713_v8  ;;  %v1272_v3 = vshra.s32 %v3476_v23, 4  ;;  %2961 = vmatmul.mubr.bf16.vlgmr.msra.gmra.mxu0 %v1701_v21 }
  0x9e   : > { %v2898_v52 = vpack.c.bf16 %v965_v51, %v964_v45  ;;  %v804_v2 = vxor.u32 8, %v740_v37  ;;  %v805_v30 = vxor.u32 8, %v741_v6  ;;  %v1273_v36 = vshra.s32 %v3478_v24, 4  ;;  %2996 = vmatprep.mubr.bf16.mxu0 %v1782_v7 }
  0x9f   : > { %v2899_v56 = vpack.c.bf16 %v967_v16, %v966_v20  ;;  %v806_v9 = vxor.u32 8, %v742_v47  ;;  %v807_v32 = vxor.u32 8, %v743_v53  ;;  %v1274_v45 = vshra.s32 %v3482_v27, 4 }
  0xa0   : > { %1200 = vst [vmem:[#allocation2 + $0xa0] sm:$0xff] %v2898_v52  ;;  %v1275_v51 = vshra.s32 %v3484_v28, 4  ;;  %v2632_v8 = vadd.s32 4294967288, %v804_v2  ;;  %v2633_v23 = vadd.s32 4294967288, %v805_v30  ;;  %v641_v21 = vunpack.c.2.s8 %v3721_v55 }
  0xa1   : > { %v3093_v25 = vld [vmem:[#allocation2 + $0x30] ss:$8 sps:$4 sm:$0xff]   ;;  %1201 = vst [vmem:[#allocation2 + $0xa8] sm:$0xff] %v2899_v56  ;;  %v642_v20 = vunpack.c.3.s8 %v3699_v44  ;;  %v2634_v16 = vadd.s32 4294967288, %v806_v9  ;;  %v2635_v6 = vadd.s32 4294967288, %v807_v32  ;;  %v1336_v37 = vxor.u32 8, %v1272_v3 }
  0xa2   : > { %v1337_v24 = vxor.u32 8, %v1273_v36  ;;  %2971 = vmatpush3.bf16.xpose.msra.mxu1 %v3093_v25  ;;  %v932_v7 = vcvt.s32.f32 %v2632_v8  ;;  %v933_v52 = vcvt.s32.f32 %v2633_v23  ;;  %v1338_v27 = vxor.u32 8, %v1274_v45  ;;  %v3731_v8 = vld [vmem:[%s3431_s26] sm:$0xff]  ;;  %v3734_v36 = vld [vmem:[%s3431_s26 + $0x8] sm:$0xff]  ;;  %s580_s26 = scalar_lea.vmem %s3939_s8, %s4007_s24 }
  0xa3   : > { %v1339_v47 = vxor.u32 8, %v1275_v51  ;;  %v934_v28 = vcvt.s32.f32 %v2634_v16  ;;  %v935_v53 = vcvt.s32.f32 %v2635_v6  ;;  %v2780_v56 = vadd.s32 4294967288, %v1336_v37 }
  0xa4   : > { %v2781_v2 = vadd.s32 4294967288, %v1337_v24  ;;  %v2882_v30 = vpack.c.bf16 %v933_v52, %v932_v7  ;;  %v2782_v49 = vadd.s32 4294967288, %v1338_v27  ;;  %v2748_v4 = vadd.s32 4294967288, %v3490_v15 }
  0xa5   : > { %v2783_v39 = vadd.s32 4294967288, %v1339_v47  ;;  %v2883_v9 = vpack.c.bf16 %v935_v53, %v934_v28  ;;  %v1464_v32 = vcvt.s32.f32 %v2780_v56  ;;  %v2749_v25 = vadd.s32 4294967288, %v3493_v13 }
  0xa6   : > { %v1465_v3 = vcvt.s32.f32 %v2781_v2  ;;  %1184 = vst [vmem:[#allocation2 + $0x20] sm:$0xff] %v2882_v30  ;;  %v1466_v45 = vcvt.s32.f32 %v2782_v49  ;;  %v2750_v23 = vadd.s32 4294967288, %v3495_v19  ;;  %v2751_v16 = vadd.s32 4294967288, %v3499_v22 }
  0xa7   : > { %v1467_v51 = vcvt.s32.f32 %v2783_v39  ;;  %1185 = vst [vmem:[#allocation2 + $0x28] sm:$0xff] %v2883_v9  ;;  %v1432_v15 = vcvt.s32.f32 %v2748_v4  ;;  %v1433_v24 = vcvt.s32.f32 %v2749_v25  ;;  %v643_v7 = vunpack.c.3.s8 %v3721_v55 }
  0xa8   : > { %v3094_v6 = vld [vmem:[#allocation2 + $0xa0] ss:$8 sps:$4 sm:$0xff]   ;;  %v2940_v37 = vpack.c.bf16 %v1465_v3, %v1464_v32  ;;  %v1434_v13 = vcvt.s32.f32 %v2750_v23  ;;  %v1435_v27 = vcvt.s32.f32 %v2751_v16  ;;  %v3975_v47 = vunpack.c.2.s8 %v3699_v44 }
  0xa9   : > { %v2941_v52 = vpack.c.bf16 %v1467_v51, %v1466_v45  ;;  %2972 = vmatprep.subr.bf16.mxu1 %v3094_v6  ;;  %v2924_v39 = vpack.c.bf16 %v1433_v24, %v1432_v15  ;;  %v3743_v19 = vand.u32 255, %v641_v21  ;;  %v3745_v22 = vand.u32 255, %v642_v20 }
  0xaa   : > { %v3741_v28 = vand.u32 255, %v3975_v47  ;;  %1690 = vst [vmem:[#allocation3 + $0x20] sm:$0xff] %v2940_v37  ;;  %v3747_v49 = vand.u32 255, %v643_v7  ;;  %v2925_v4 = vpack.c.bf16 %v1435_v27, %v1434_v13  ;;  %v608_v56 = vunpack.c.2.s8 %v3731_v8 }
  0xab   : > { %1691 = vst [vmem:[#allocation3 + $0x98] sm:$0xff] %v2941_v52  ;;  %v609_v2 = vunpack.c.2.s8 %v3734_v36  ;;  %1674 = vst [vmem:[#allocation3 + $0x8] sm:$0xff] %v2924_v39  ;;  %v769_v30 = vand.u32 15, %v3743_v19  ;;  %v770_v9 = vand.u32 15, %v3745_v22  ;;  %v610_v20 = vunpack.c.3.s8 %v3731_v8 }
  0xac   : > { %v768_v53 = vand.u32 15, %v3741_v28  ;;  %v771_v21 = vand.u32 15, %v3747_v49  ;;  %1675 = vst [vmem:[#allocation3 + $0x78] sm:$0xff] %v2925_v4  ;;  %v611_v3 = vunpack.c.3.s8 %v3734_v36  ;;  %v3757_v25 = vand.u32 255, %v608_v56 }
  0xad   : > { %v3759_v45 = vand.u32 255, %v609_v2  ;;  %v833_v51 = vxor.u32 8, %v769_v30  ;;  %v834_v23 = vxor.u32 8, %v770_v9  ;;  %v3761_v6 = vand.u32 255, %v610_v20 }
  0xae   : > { %v832_v32 = vxor.u32 8, %v768_v53  ;;  %3976 = vst [vmem:[#allocation27_spill] sm:$0xff] %v3757_v25  ;;  %v835_v16 = vxor.u32 8, %v771_v21  ;;  %v3095_v37 = vld [vmem:[#allocation2 + $0x20] ss:$8 sps:$4 sm:$0xff]   ;;  %v3763_v24 = vand.u32 255, %v611_v3 }
  0xaf   : > { %3977 = vst [vmem:[#allocation28_spill] sm:$0xff] %v3759_v45  ;;  %3978 = vst [vmem:[#allocation29_spill] sm:$0xff] %v3761_v6  ;;  %v2661_v13 = vadd.s32 4294967288, %v833_v51  ;;  %v2662_v27 = vadd.s32 4294967288, %v834_v23  ;;  %v736_v39 = vand.u32 15, %v3757_v25  ;;  %2973 = vmatpush3.bf16.xpose.msra.mxu1 %v3095_v37  ;;  %v737_v53 = vand.u32 15, %v3759_v45 }
  0xb0   : > { %v2660_v15 = vadd.s32 4294967288, %v832_v32  ;;  %3979 = vst [vmem:[#allocation30_spill] sm:$0xff] %v3763_v24  ;;  %v2663_v47 = vadd.s32 4294967288, %v835_v16  ;;  %v738_v56 = vand.u32 15, %v3761_v6  ;;  %v739_v2 = vand.u32 15, %v3763_v24 }
  0xb1   : > { %v961_v9 = vcvt.s32.f32 %v2661_v13  ;;  %v962_v21 = vcvt.s32.f32 %v2662_v27  ;;  %v800_v32 = vxor.u32 8, %v736_v39  ;;  %v801_v3 = vxor.u32 8, %v737_v53 }
  0xb2   : > { %v960_v4 = vcvt.s32.f32 %v2660_v15  ;;  %v3096_v30 = vld [vmem:[#allocation3 + $0x20] ss:$120 sps:$4 sm:$0xff]   ;;  %v963_v20 = vcvt.s32.f32 %v2663_v47  ;;  %v802_v52 = vxor.u32 8, %v738_v56  ;;  %v803_v51 = vxor.u32 8, %v739_v2 }
  0xb3   : > { %v1268_v23 = vshra.s32 %v3504_v29, 4  ;;  %2980 = vmatprep.subr.bf16.mxu0 %v3096_v30  ;;  %v3097_v16 = vld [vmem:[#allocation3 + $0x8] ss:$112 sps:$4 sm:$0xff]   ;;  %v2628_v7 = vadd.s32 4294967288, %v800_v32  ;;  %v1269_v45 = vshra.s32 %v3511_v33, 4  ;;  %v2629_v6 = vadd.s32 4294967288, %v801_v3 }
  0xb4   : > { %v2896_v37 = vpack.c.bf16 %v961_v9, %v960_v4  ;;  %v2897_v15 = vpack.c.bf16 %v963_v20, %v962_v21  ;;  %v2630_v25 = vadd.s32 4294967288, %v802_v52  ;;  %v2631_v24 = vadd.s32 4294967288, %v803_v51  ;;  %2981 = vmatpush3.bf16.xpose.msra.mxu0 %v3097_v16 }
  0xb5   : > { %v1270_v13 = vshra.s32 %v3513_v34, 4  ;;  %v928_v27 = vcvt.s32.f32 %v2628_v7  ;;  %v1271_v47 = vshra.s32 %v3515_v11, 4  ;;  %v1332_v39 = vxor.u32 8, %v1268_v23 }
  0xb6   : > { %1198 = vst [vmem:[#allocation2 + $0x90] sm:$0xff] %v2896_v37  ;;  %1199 = vst [vmem:[#allocation2 + $0x98] sm:$0xff] %v2897_v15  ;;  %v1333_v29 = vxor.u32 8, %v1269_v45  ;;  %v929_v53 = vcvt.s32.f32 %v2629_v6  ;;  %v930_v56 = vcvt.s32.f32 %v2630_v25  ;;  %v931_v4 = vcvt.s32.f32 %v2631_v24 }
  0xb7   : > { %v1334_v2 = vxor.u32 8, %v1270_v13  ;;  %v1335_v30 = vxor.u32 8, %v1271_v47  ;;  %v2776_v9 = vadd.s32 4294967288, %v1332_v39  ;;  %v1236_v52 = vshra.s32 %v3525_v38, 4 }
  0xb8   : > { %v2777_v33 = vadd.s32 4294967288, %v1333_v29  ;;  %v2880_v21 = vpack.c.bf16 %v929_v53, %v928_v27  ;;  %v2881_v20 = vpack.c.bf16 %v931_v4, %v930_v56  ;;  %v1237_v32 = vshra.s32 %v3527_v17, 4 }
  0xb9   : > { %v2778_v34 = vadd.s32 4294967288, %v1334_v2  ;;  %v2779_v3 = vadd.s32 4294967288, %v1335_v30  ;;  %v1460_v7 = vcvt.s32.f32 %v2776_v9  ;;  %v1238_v11 = vshra.s32 %v3529_v10, 4 }
  0xba   : > { %v1461_v51 = vcvt.s32.f32 %v2777_v33  ;;  %1182 = vst [vmem:[#allocation2 + $0x10] sm:$0xff] %v2880_v21  ;;  %1183 = vst [vmem:[#allocation2 + $0x18] sm:$0xff] %v2881_v20  ;;  %v1239_v45 = vshra.s32 %v3540_v42, 4  ;;  %v1300_v6 = vxor.u32 8, %v1236_v52  ;;  %v1301_v24 = vxor.u32 8, %v1237_v32 }
  0xbb   : > { %v1462_v25 = vcvt.s32.f32 %v2778_v34  ;;  %v1463_v23 = vcvt.s32.f32 %v2779_v3  ;;  %v1302_v38 = vxor.u32 8, %v1238_v11  ;;  %v638_v37 = vunpack.c.1.s8 %v3699_v44 }
  0xbc   : > { %v2938_v16 = vpack.c.bf16 %v1461_v51, %v1460_v7  ;;  %v639_v17 = vunpack.c.1.s8 %v3721_v55  ;;  %v604_v13 = vunpack.c.0.s8 %v3731_v8  ;;  %v605_v27 = vunpack.c.0.s8 %v3734_v36 }
  0xbd   : > { %v3098_v15 = vld [vmem:[#allocation2 + $0x90] ss:$8 sps:$4 sm:$0xff]   ;;  %v606_v10 = vunpack.c.1.s8 %v3731_v8  ;;  %v2939_v47 = vpack.c.bf16 %v1463_v23, %v1462_v25  ;;  %v1303_v39 = vxor.u32 8, %v1239_v45  ;;  %v2744_v42 = vadd.s32 4294967288, %v1300_v6 }
  0xbe   : > { %1688 = vst [vmem:[#allocation3 + $0xa0] sm:$0xff] %v2938_v16  ;;  %v2745_v29 = vadd.s32 4294967288, %v1301_v24  ;;  %2974 = vmatprep.subr.bf16.mxu1 %v3098_v15  ;;  %v2746_v53 = vadd.s32 4294967288, %v1302_v38  ;;  %v3980_v56 = vunpack.c.0.s8 %v3699_v44  ;;  %v3981_v2 = vunpack.c.0.s8 %v3721_v55 }
  0xbf   : > { %v3792_v9 = vand.u32 255, %v638_v37  ;;  %1689 = vst [vmem:[#allocation3 + $0xf8] sm:$0xff] %v2939_v47  ;;  %v2747_v33 = vadd.s32 4294967288, %v1303_v39  ;;  %v1428_v8 = vcvt.s32.f32 %v2744_v42  ;;  %v3794_v21 = vand.u32 255, %v639_v17 }
  0xc0   : > { %v3786_v4 = vand.u32 255, %v3980_v56  ;;  %v3790_v30 = vand.u32 255, %v3981_v2  ;;  %v1429_v52 = vcvt.s32.f32 %v2745_v29  ;;  %v1430_v20 = vcvt.s32.f32 %v2746_v53 }
  0xc1   : > { %v766_v44 = vand.u32 15, %v3792_v9  ;;  %v3099_v3 = vld [vmem:[#allocation2 + $0x10] ss:$8 sps:$4 sm:$0xff]   ;;  %v1431_v7 = vcvt.s32.f32 %v2747_v33  ;;  %v607_v51 = vunpack.c.1.s8 %v3734_v36  ;;  %v767_v11 = vand.u32 15, %v3794_v21 }
  0xc2   : > { %v764_v34 = vand.u32 15, %v3786_v4  ;;  %v765_v32 = vand.u32 15, %v3790_v30  ;;  %v2922_v55 = vpack.c.bf16 %v1429_v52, %v1428_v8  ;;  %2975 = vmatpush3.bf16.xpose.msra.mxu1 %v3099_v3  ;;  %v3801_v23 = vand.u32 255, %v604_v13 }
  0xc3   : > { %v830_v6 = vxor.u32 8, %v766_v44  ;;  %v2923_v24 = vpack.c.bf16 %v1431_v7, %v1430_v20  ;;  %v3803_v16 = vand.u32 255, %v605_v27  ;;  %v3805_v38 = vand.u32 255, %v606_v10 }
  0xc4   : > { %v828_v25 = vxor.u32 8, %v764_v34  ;;  %v829_v45 = vxor.u32 8, %v765_v32  ;;  %1672 = vst [vmem:[#allocation3 + $0x60] sm:$0xff] %v2922_v55  ;;  %v831_v37 = vxor.u32 8, %v767_v11  ;;  %v3807_v36 = vand.u32 255, %v607_v51 }
  0xc5   : > { %v2658_v47 = vadd.s32 4294967288, %v830_v6  ;;  %1673 = vst [vmem:[#allocation3 + $0xf0] sm:$0xff] %v2923_v24  ;;  %v732_v39 = vand.u32 15, %v3801_v23  ;;  %v733_v42 = vand.u32 15, %v3803_v16  ;;  %v734_v29 = vand.u32 15, %v3805_v38 }
  0xc6   : > { %v2656_v15 = vadd.s32 4294967288, %v828_v25  ;;  %v2657_v17 = vadd.s32 4294967288, %v829_v45  ;;  %v3100_v53 = vld [vmem:[#allocation3 + $0xa0] ss:$88 sps:$4 sm:$0xff]   ;;  %v2659_v13 = vadd.s32 4294967288, %v831_v37  ;;  %v735_v10 = vand.u32 15, %v3807_v36 }
  0xc7   : > { %v958_v2 = vcvt.s32.f32 %v2658_v47  ;;  %v796_v33 = vxor.u32 8, %v732_v39  ;;  %v797_v8 = vxor.u32 8, %v733_v42  ;;  %v798_v52 = vxor.u32 8, %v734_v29  ;;  %2982 = vmatprep.subr.bf16.mxu0 %v3100_v53 }
  0xc8   : > { %v956_v56 = vcvt.s32.f32 %v2656_v15  ;;  %v957_v27 = vcvt.s32.f32 %v2657_v17  ;;  %v959_v20 = vcvt.s32.f32 %v2659_v13  ;;  %v1264_v32 = vshra.s32 %v3555_v5, 4 }
  0xc9   : > { %v1265_v44 = vshra.s32 %v3560_v12, 4  ;;  %v799_v3 = vxor.u32 8, %v735_v10  ;;  %v2624_v7 = vadd.s32 4294967288, %v796_v33  ;;  %v2625_v55 = vadd.s32 4294967288, %v797_v8 }
  0xca   : > { %v2894_v34 = vpack.c.bf16 %v957_v27, %v956_v56  ;;  %v2626_v51 = vadd.s32 4294967288, %v798_v52  ;;  %v2895_v11 = vpack.c.bf16 %v959_v20, %v958_v2  ;;  %v1266_v25 = vshra.s32 %v3565_v41, 4 }
  0xcb   : > { %v1267_v45 = vshra.s32 %v3567_v43, 4  ;;  %v1328_v6 = vxor.u32 8, %v1264_v32  ;;  %v2627_v24 = vadd.s32 4294967288, %v799_v3  ;;  %v924_v37 = vcvt.s32.f32 %v2624_v7 }
  0xcc   : > { %1196 = vst [vmem:[#allocation2 + $0x80] sm:$0xff] %v2894_v34  ;;  %v925_v15 = vcvt.s32.f32 %v2625_v55  ;;  %v926_v17 = vcvt.s32.f32 %v2626_v51  ;;  %v3101_v47 = vld [vmem:[#allocation3 + $0x60] ss:$144 sps:$4 sm:$0xff]   ;;  %1197 = vst [vmem:[#allocation2 + $0x88] sm:$0xff] %v2895_v11  ;;  %v1329_v5 = vxor.u32 8, %v1265_v44  ;;  %v1330_v39 = vxor.u32 8, %v1266_v25 }
  0xcd   : > { %v927_v12 = vcvt.s32.f32 %v2627_v24  ;;  %v1331_v29 = vxor.u32 8, %v1267_v45  ;;  %v2772_v53 = vadd.s32 4294967288, %v1328_v6  ;;  %2983 = vmatpush3.bf16.xpose.msra.mxu0 %v3101_v47  ;;  %v1232_v41 = vshra.s32 %v3577_v59, 4 }
  0xce   : > { %v2878_v42 = vpack.c.bf16 %v925_v15, %v924_v37  ;;  %v2773_v13 = vadd.s32 4294967288, %v1329_v5  ;;  %v2774_v56 = vadd.s32 4294967288, %v1330_v39  ;;  %v1233_v43 = vshra.s32 %v3579_v60, 4 }
  0xcf   : > { %v2879_v27 = vpack.c.bf16 %v927_v12, %v926_v17  ;;  %v2775_v2 = vadd.s32 4294967288, %v1331_v29  ;;  %v1456_v10 = vcvt.s32.f32 %v2772_v53  ;;  %v1234_v33 = vshra.s32 %v3581_v63, 4  ;;  %v3106_v17 = vld [vmem:[#allocation2 + $0xf4] ss:$8 sps:$4 sm:$0xff]  }
  0xd0   : > { %1180 = vst [vmem:[#allocation2] sm:$0xff] %v2878_v42  ;;  %v1457_v8 = vcvt.s32.f32 %v2773_v13  ;;  %v1458_v52 = vcvt.s32.f32 %v2774_v56  ;;  %v1235_v20 = vshra.s32 %v3583_v0, 4  ;;  %v1296_v34 = vxor.u32 8, %v1232_v41 }
  0xd1   : > { %1181 = vst [vmem:[#allocation2 + $0x8] sm:$0xff] %v2879_v27  ;;  %v1459_v32 = vcvt.s32.f32 %v2775_v2  ;;  %v1297_v44 = vxor.u32 8, %v1233_v43  ;;  %v1298_v3 = vxor.u32 8, %v1234_v33  ;;  %v1260_v7 = vshra.s32 %v3595_v57, 4 }
  0xd2   : > { %v2936_v59 = vpack.c.bf16 %v1457_v8, %v1456_v10  ;;  %v1299_v55 = vxor.u32 8, %v1235_v20  ;;  %v2740_v60 = vadd.s32 4294967288, %v1296_v34  ;;  %v1261_v51 = vshra.s32 %v3597_v58, 4 }
  0xd3   : > { %v3102_v11 = vld [vmem:[#allocation2 + $0x80] ss:$8 sps:$4 sm:$0xff]   ;;  %v2937_v25 = vpack.c.bf16 %v1459_v32, %v1458_v52  ;;  %v2741_v45 = vadd.s32 4294967288, %v1297_v44  ;;  %v2742_v63 = vadd.s32 4294967288, %v1298_v3  ;;  %v1262_v0 = vshra.s32 %v3599_v62, 4 }
  0xd4   : > { %1686 = vst [vmem:[#allocation3 + $0x10] sm:$0xff] %v2936_v59  ;;  %v2743_v6 = vadd.s32 4294967288, %v1299_v55  ;;  %v1424_v24 = vcvt.s32.f32 %v2740_v60  ;;  %v1263_v37 = vshra.s32 %v3601_v1, 4  ;;  %2976 = vmatprep.subr.bf16.mxu1 %v3102_v11  ;;  %v1324_v47 = vxor.u32 8, %v1260_v7 }
  0xd5   : > { %1687 = vst [vmem:[#allocation3 + $0x28] sm:$0xff] %v2937_v25  ;;  %v1425_v15 = vcvt.s32.f32 %v2741_v45  ;;  %v1426_v57 = vcvt.s32.f32 %v2742_v63  ;;  %v1325_v5 = vxor.u32 8, %v1261_v51  ;;  %v1326_v58 = vxor.u32 8, %v1262_v0  ;;  %v3107_v45 = vld [vmem:[#allocation2 + $0x74] ss:$8 sps:$4 sm:$0xff]  }
  0xd6   : > { %v1427_v39 = vcvt.s32.f32 %v2743_v6  ;;  %v1327_v12 = vxor.u32 8, %v1263_v37  ;;  %v1228_v42 = vshra.s32 %v3617_v26, 4  ;;  %v2768_v53 = vadd.s32 4294967288, %v1324_v47 }
  0xd7   : > { %v2920_v29 = vpack.c.bf16 %v1425_v15, %v1424_v24  ;;  %v2769_v13 = vadd.s32 4294967288, %v1325_v5  ;;  %v1229_v56 = vshra.s32 %v3619_v31, 4  ;;  %v2770_v1 = vadd.s32 4294967288, %v1326_v58  ;;  %v3110_v15 = vld [vmem:[#allocation2 + $0xe4] ss:$8 sps:$4 sm:$0xff]   ;;  %v3982_v58 = vld [vmem:[#allocation18_spill] sm:$0xff] }
  0xd8   : > { %v3103_v62 = vld [vmem:[#allocation2] ss:$8 sps:$4 sm:$0xff]   ;;  %v2921_v41 = vpack.c.bf16 %v1427_v39, %v1426_v57  ;;  %v2771_v43 = vadd.s32 4294967288, %v1327_v12  ;;  %v1452_v27 = vcvt.s32.f32 %v2768_v53  ;;  %v1230_v10 = vshra.s32 %v3621_v40, 4 }
  0xd9   : > { %1670 = vst [vmem:[#allocation3 + $0xe8] sm:$0xff] %v2920_v29  ;;  %v1453_v2 = vcvt.s32.f32 %v2769_v13  ;;  %v1231_v33 = vshra.s32 %v3623_v18, 4  ;;  %2977 = vmatpush3.bf16.xpose.msra.mxu1 %v3103_v62  ;;  %v1454_v8 = vcvt.s32.f32 %v2770_v1  ;;  %v1292_v52 = vxor.u32 8, %v1228_v42  ;;  %v3131_v40 = vld [vmem:[%s3931_s0] sm:$0xff] }
  0xda   : > { %1671 = vst [vmem:[#allocation3 + $0xb8] sm:$0xff] %v2921_v41  ;;  %v1455_v26 = vcvt.s32.f32 %v2771_v43  ;;  %v1293_v20 = vxor.u32 8, %v1229_v56  ;;  %2998 = vmatprep.subr.bf16.mxu1 %v3106_v17  ;;  %v1294_v31 = vxor.u32 8, %v1230_v10  ;;  %v1256_v44 = vshra.s32 %v3644_v48, 4  ;;  %v3983_v13 = vld [vmem:[#allocation19_spill] sm:$0xff]  ;;  %v3984_v43 = vld [vmem:[#allocation20_spill] sm:$0xff] }
  0xdb   : > { %v2934_v34 = vpack.c.bf16 %v1453_v2, %v1452_v27  ;;  %v1295_v32 = vxor.u32 8, %v1231_v33  ;;  %v2736_v59 = vadd.s32 4294967288, %v1292_v52  ;;  %v3833_v18 = vcombine.high %v3131_v40, %v3131_v40 }
  0xdc   : > { %v3104_v3 = vld [vmem:[#allocation3 + $0x10] ss:$24 sps:$4 sm:$0xff]   ;;  %v2935_v7 = vpack.c.bf16 %v1455_v26, %v1454_v8  ;;  %v2737_v55 = vadd.s32 4294967288, %v1293_v20  ;;  %v2738_v60 = vadd.s32 4294967288, %v1294_v31  ;;  %v1257_v11 = vshra.s32 %v3646_v50, 4 }
  0xdd   : > { %1684 = vst [vmem:[#allocation3 + $0xa8] sm:$0xff] %v2934_v34  ;;  %v2739_v51 = vadd.s32 4294967288, %v1295_v32  ;;  %v1258_v25 = vshra.s32 %v3651_v54, 4  ;;  %2984 = vmatprep.subr.bf16.mxu0 %v3104_v3  ;;  %v1420_v48 = vcvt.s32.f32 %v2736_v59  ;;  %v1259_v6 = vshra.s32 %v3653_v35, 4 }
  0xde   : > { %1685 = vst [vmem:[#allocation3 + $0xd0] sm:$0xff] %v2935_v7  ;;  %v1421_v63 = vcvt.s32.f32 %v2737_v55  ;;  %v1320_v24 = vxor.u32 8, %v1256_v44  ;;  %v1422_v0 = vcvt.s32.f32 %v2738_v60  ;;  %v1321_v57 = vxor.u32 8, %v1257_v11  ;;  %v3985_v60 = vld [vmem:[#allocation21_spill] sm:$0xff]  ;;  %v3986_v11 = vld [vmem:[#allocation22_spill] sm:$0xff] }
  0xdf   : > { %v1423_v37 = vcvt.s32.f32 %v2739_v51  ;;  %v1322_v17 = vxor.u32 8, %v1258_v25  ;;  %v1323_v5 = vxor.u32 8, %v1259_v6  ;;  %v1224_v50 = vshra.s32 %v3982_v58, 4 }
  0xe0   : > { %v2918_v47 = vpack.c.bf16 %v1421_v63, %v1420_v48  ;;  %v2764_v39 = vadd.s32 4294967288, %v1320_v24  ;;  %2979 = vmatmul.mubr.bf16.vlgmr.msra.gmra.mxu1 %v3131_v40  ;;  %v2765_v42 = vadd.s32 4294967288, %v1321_v57  ;;  %v1225_v56 = vshra.s32 %v3983_v13, 4  ;;  %v3114_v40 = vld [vmem:[#allocation2 + $0xd4] ss:$8 sps:$4 sm:$0xff]  }
  0xe1   : > { %v3105_v12 = vld [vmem:[#allocation3 + $0xe8] ss:$-48 sps:$4 sm:$0xff]   ;;  %v2919_v54 = vpack.c.bf16 %v1423_v37, %v1422_v0  ;;  %v2766_v29 = vadd.s32 4294967288, %v1322_v17  ;;  %2999 = vmatpush3.bf16.xpose.msra.mxu1 %v3107_v45  ;;  %v2767_v53 = vadd.s32 4294967288, %v1323_v5  ;;  %v1226_v62 = vshra.s32 %v3667_v46, 4  ;;  %3014 = vmatprep.mubr.bf16.mxu1 %v3833_v18 }
  0xe2   : > { %1668 = vst [vmem:[#allocation3 + $0x80] sm:$0xff] %v2918_v47  ;;  %v1448_v35 = vcvt.s32.f32 %v2764_v39  ;;  %2985 = vmatpush3.bf16.xpose.msra.mxu0 %v3105_v12  ;;  %3000 = vmatprep.subr.bf16.mxu1 %v3110_v15  ;;  %v1449_v41 = vcvt.s32.f32 %v2765_v42  ;;  %v1227_v27 = vshra.s32 %v3984_v43, 4  ;;  %v1288_v2 = vxor.u32 8, %v1224_v50  ;;  %v3111_v46 = vld [vmem:[#allocation2 + $0x64] ss:$8 sps:$4 sm:$0xff]  }
  0xe3   : > { %1669 = vst [vmem:[#allocation3 + $0x88] sm:$0xff] %v2919_v54  ;;  %v1450_v1 = vcvt.s32.f32 %v2766_v29  ;;  %v1451_v10 = vcvt.s32.f32 %v2767_v53  ;;  %v1289_v33 = vxor.u32 8, %v1225_v56  ;;  %v1290_v8 = vxor.u32 8, %v1226_v62  ;;  %v3987_v37 = vld [vmem:[#allocation23_spill] sm:$0xff]  ;;  %v3988_v50 = vld [vmem:[#allocation24_spill] sm:$0xff]  ;;  %v3989_v29 = vld [vmem:[#allocation25_spill] sm:$0xff] }
  0xe4   : > { %v1252_v26 = vshra.s32 %v3681_v14, 4  ;;  %v2932_v20 = vpack.c.bf16 %v1449_v41, %v1448_v35  ;;  %v1291_v34 = vxor.u32 8, %v1227_v27  ;;  %v2732_v31 = vadd.s32 4294967288, %v1288_v2  ;;  %v3990_v35 = vld [vmem:[#allocation26_spill] sm:$0xff]  ;;  %v3118_v27 = vld [vmem:[#allocation2 + $0xc4] ss:$8 sps:$4 sm:$0xff]  }
  0xe5   : > { %v3108_v52 = vld [vmem:[#allocation3 + $0xa8] ss:$40 sps:$4 sm:$0xff]   ;;  %v2933_v32 = vpack.c.bf16 %v1451_v10, %v1450_v1  ;;  %v2733_v44 = vadd.s32 4294967288, %v1289_v33  ;;  %v2734_v3 = vadd.s32 4294967288, %v1290_v8  ;;  %v1253_v7 = vshra.s32 %v3683_v61, 4 }
  0xe6   : > { %2986 = vmatprep.subr.bf16.mxu0 %v3108_v52  ;;  %1682 = vst [vmem:[#allocation3 + $0x70] sm:$0xff] %v2932_v20  ;;  %v2735_v59 = vadd.s32 4294967288, %v1291_v34  ;;  %v1416_v55 = vcvt.s32.f32 %v2732_v31  ;;  %v1254_v51 = vshra.s32 %v3985_v60, 4  ;;  %v1255_v25 = vshra.s32 %v3986_v11, 4  ;;  %v3115_v56 = vld [vmem:[#allocation2 + $0x54] ss:$8 sps:$4 sm:$0xff]  }
  0xe7   : > { %1683 = vst [vmem:[#allocation3 + $0xc0] sm:$0xff] %v2933_v32  ;;  %v1417_v14 = vcvt.s32.f32 %v2733_v44  ;;  %v1418_v45 = vcvt.s32.f32 %v2734_v3  ;;  %v1316_v48 = vxor.u32 8, %v1252_v26  ;;  %v1317_v63 = vxor.u32 8, %v1253_v7 }
  0xe8   : > { %v1419_v6 = vcvt.s32.f32 %v2735_v59  ;;  %v1318_v24 = vxor.u32 8, %v1254_v51  ;;  %v1319_v0 = vxor.u32 8, %v1255_v25  ;;  %v1220_v15 = vshra.s32 %v3987_v37, 4 }
  0xe9   : > { %3001 = vmatpush3.bf16.xpose.msra.mxu1 %v3111_v46  ;;  %v2916_v57 = vpack.c.bf16 %v1417_v14, %v1416_v55  ;;  %v2760_v17 = vadd.s32 4294967288, %v1316_v48  ;;  %v2761_v47 = vadd.s32 4294967288, %v1317_v63  ;;  %v1221_v12 = vshra.s32 %v3988_v50, 4  ;;  %v3121_v50 = vld [vmem:[#allocation2 + $0xb4] ss:$8 sps:$4 sm:$0xff]  }
  0xea   : > { %v3109_v61 = vld [vmem:[#allocation3 + $0x80] ss:$8 sps:$4 sm:$0xff]   ;;  %v2917_v5 = vpack.c.bf16 %v1419_v6, %v1418_v45  ;;  %3002 = vmatprep.subr.bf16.mxu1 %v3114_v40  ;;  %v2762_v39 = vadd.s32 4294967288, %v1318_v24  ;;  %v2763_v58 = vadd.s32 4294967288, %v1319_v0  ;;  %v1222_v53 = vshra.s32 %v3989_v29, 4 }
  0xeb   : > { %2987 = vmatpush3.bf16.xpose.msra.mxu0 %v3109_v61  ;;  %1666 = vst [vmem:[#allocation3 + $0x30] sm:$0xff] %v2916_v57  ;;  %v1444_v54 = vcvt.s32.f32 %v2760_v17  ;;  %v1445_v42 = vcvt.s32.f32 %v2761_v47  ;;  %v1223_v13 = vshra.s32 %v3990_v35, 4  ;;  %v1284_v1 = vxor.u32 8, %v1220_v15  ;;  %v3991_v45 = vld [vmem:[#allocation27_spill] sm:$0xff]  ;;  %v3993_v15 = vld [vmem:[#allocation29_spill] sm:$0xff] }
  0xec   : > { %1667 = vst [vmem:[#allocation3 + $0x48] sm:$0xff] %v2917_v5  ;;  %v1446_v62 = vcvt.s32.f32 %v2762_v39  ;;  %v1447_v41 = vcvt.s32.f32 %v2763_v58  ;;  %v1285_v43 = vxor.u32 8, %v1221_v12  ;;  %v1286_v10 = vxor.u32 8, %v1222_v53  ;;  %v3119_v57 = vld [vmem:[#allocation2 + $0x44] ss:$8 sps:$4 sm:$0xff]   ;;  %v3994_v5 = vld [vmem:[#allocation30_spill] sm:$0xff] }
  0xed   : > { %v2930_v2 = vpack.c.bf16 %v1445_v42, %v1444_v54  ;;  %v1287_v33 = vxor.u32 8, %v1223_v13  ;;  %v1248_v8 = vshra.s32 %v3741_v28, 4  ;;  %v2728_v20 = vadd.s32 4294967288, %v1284_v1 }
  0xee   : > { %v3112_v26 = vld [vmem:[#allocation3 + $0x70] ss:$80 sps:$4 sm:$0xff]   ;;  %v2931_v52 = vpack.c.bf16 %v1447_v41, %v1446_v62  ;;  %v2729_v34 = vadd.s32 4294967288, %v1285_v43  ;;  %v2730_v31 = vadd.s32 4294967288, %v1286_v10  ;;  %v1249_v32 = vshra.s32 %v3743_v19, 4 }
  0xef   : > { %1680 = vst [vmem:[#allocation3 + $0xe0] sm:$0xff] %v2930_v2  ;;  %v2731_v46 = vadd.s32 4294967288, %v1287_v33  ;;  %v1250_v44 = vshra.s32 %v3745_v22, 4  ;;  %2988 = vmatprep.subr.bf16.mxu0 %v3112_v26  ;;  %v1412_v3 = vcvt.s32.f32 %v2728_v20  ;;  %v1251_v59 = vshra.s32 %v3747_v49, 4  ;;  %v3992_v49 = vld [vmem:[#allocation28_spill] sm:$0xff] }
  0xf0   : > { %1681 = vst [vmem:[#allocation3 + $0x90] sm:$0xff] %v2931_v52  ;;  %v1413_v7 = vcvt.s32.f32 %v2729_v34  ;;  %v1312_v55 = vxor.u32 8, %v1248_v8  ;;  %v1414_v28 = vcvt.s32.f32 %v2730_v31  ;;  %v1313_v60 = vxor.u32 8, %v1249_v32 }
  0xf1   : > { %3003 = vmatpush3.bf16.xpose.msra.mxu1 %v3115_v56  ;;  %v1415_v40 = vcvt.s32.f32 %v2731_v46  ;;  %v1314_v51 = vxor.u32 8, %v1250_v44  ;;  %v1315_v25 = vxor.u32 8, %v1251_v59  ;;  %v1216_v19 = vshra.s32 %v3991_v45, 4  ;;  %v3122_v59 = vld [vmem:[#allocation2 + $0x34] ss:$8 sps:$4 sm:$0xff]  }
  0xf2   : > { %v2914_v11 = vpack.c.bf16 %v1413_v7, %v1412_v3  ;;  %3004 = vmatprep.subr.bf16.mxu1 %v3118_v27  ;;  %v2756_v14 = vadd.s32 4294967288, %v1312_v55  ;;  %v2757_v63 = vadd.s32 4294967288, %v1313_v60  ;;  %v1217_v37 = vshra.s32 %v3992_v49, 4 }
  0xf3   : > { %v3113_v48 = vld [vmem:[#allocation3 + $0x30] ss:$24 sps:$4 sm:$0xff]   ;;  %v2915_v22 = vpack.c.bf16 %v1415_v40, %v1414_v28  ;;  %v2758_v6 = vadd.s32 4294967288, %v1314_v51  ;;  %v2759_v24 = vadd.s32 4294967288, %v1315_v25  ;;  %v1218_v61 = vshra.s32 %v3993_v15, 4 }
  0xf4   : > { %1664 = vst [vmem:[#allocation3 + $0x50] sm:$0xff] %v2914_v11  ;;  %v1440_v0 = vcvt.s32.f32 %v2756_v14  ;;  %2989 = vmatpush3.bf16.xpose.msra.mxu0 %v3113_v48  ;;  %v1441_v17 = vcvt.s32.f32 %v2757_v63  ;;  %v1219_v39 = vshra.s32 %v3994_v5, 4  ;;  %v1280_v58 = vxor.u32 8, %v1216_v19  ;;  %v3124_v11 = vld [vmem:[#allocation2 + $0xa4] ss:$8 sps:$4 sm:$0xff]  }
  0xf5   : > { %1665 = vst [vmem:[#allocation3 + $0x68] sm:$0xff] %v2915_v22  ;;  %v1442_v47 = vcvt.s32.f32 %v2758_v6  ;;  %v1443_v12 = vcvt.s32.f32 %v2759_v24  ;;  %v1281_v54 = vxor.u32 8, %v1217_v37  ;;  %v1282_v42 = vxor.u32 8, %v1218_v61  ;;  %v1759_v19 = vld [vmem:[%s3935_s4] sm:$0xff]  ;;  %v2848_v63 = vld [vmem:[%s3933_s2 + $0x8] sm:$0xff] }
  0xf6   : > { %v1244_v29 = vshra.s32 %v3786_v4, 4  ;;  %v2928_v35 = vpack.c.bf16 %v1441_v17, %v1440_v0  ;;  %v1283_v13 = vxor.u32 8, %v1219_v39  ;;  %v2724_v56 = vadd.s32 4294967288, %v1280_v58  ;;  %v3125_v58 = vld [vmem:[#allocation2 + $0x24] ss:$8 sps:$4 sm:$0xff]  }
  0xf7   : > { %v3116_v53 = vld [vmem:[#allocation3 + $0xe0] ss:$-80 sps:$4 sm:$0xff]   ;;  %v2929_v62 = vpack.c.bf16 %v1443_v12, %v1442_v47  ;;  %v2725_v41 = vadd.s32 4294967288, %v1281_v54  ;;  %v2726_v1 = vadd.s32 4294967288, %v1282_v42  ;;  %v1245_v43 = vshra.s32 %v3790_v30, 4 }
  0xf8   : > { %2990 = vmatprep.subr.bf16.mxu0 %v3116_v53  ;;  %1678 = vst [vmem:[#allocation3 + $0x40] sm:$0xff] %v2928_v35  ;;  %v2727_v27 = vadd.s32 4294967288, %v1283_v13  ;;  %v1408_v2 = vcvt.s32.f32 %v2724_v56  ;;  %v1246_v10 = vshra.s32 %v3792_v9, 4  ;;  %v1247_v33 = vshra.s32 %v3794_v21, 4  ;;  %v3126_v42 = vld [vmem:[#allocation2 + $0x94] ss:$8 sps:$4 sm:$0xff]  }
  0xf9   : > { %3005 = vmatpush3.bf16.xpose.msra.mxu1 %v3119_v57  ;;  %1679 = vst [vmem:[#allocation3 + $0xc8] sm:$0xff] %v2929_v62  ;;  %v1409_v4 = vcvt.s32.f32 %v2725_v41  ;;  %v1410_v8 = vcvt.s32.f32 %v2726_v1  ;;  %v1308_v26 = vxor.u32 8, %v1244_v29  ;;  %v1309_v52 = vxor.u32 8, %v1245_v43  ;;  %v1952_v57 = vld [vmem:[%s3933_s2] sm:$0xff]  ;;  %v3127_v56 = vld [vmem:[#allocation2 + $0x14] ss:$8 sps:$4 sm:$0xff]  }
  0xfa   : > { %3006 = vmatprep.subr.bf16.mxu1 %v3121_v50  ;;  %v1411_v20 = vcvt.s32.f32 %v2727_v27  ;;  %v1310_v34 = vxor.u32 8, %v1246_v10  ;;  %v1311_v31 = vxor.u32 8, %v1247_v33  ;;  %v1212_v30 = vshra.s32 %v3801_v23, 4  ;;  %v2867_v50 = vld [vmem:[%s3933_s2 + $0x10] sm:$0xff]  ;;  %v3128_v62 = vld [vmem:[#allocation2 + $0x84] ss:$8 sps:$4 sm:$0xff]  }
  0xfb   : > { %v2912_v32 = vpack.c.bf16 %v1409_v4, %v1408_v2  ;;  %v2752_v44 = vadd.s32 4294967288, %v1308_v26  ;;  %v2753_v3 = vadd.s32 4294967288, %v1309_v52  ;;  %v1213_v21 = vshra.s32 %v3803_v16, 4  ;;  %v3129_v1 = vld [vmem:[#allocation2 + $0x4] ss:$8 sps:$4 sm:$0xff]  }
  0xfc   : > { %v3117_v46 = vld [vmem:[#allocation3 + $0x50] ss:$24 sps:$4 sm:$0xff]   ;;  %v2913_v7 = vpack.c.bf16 %v1411_v20, %v1410_v8  ;;  %v2754_v9 = vadd.s32 4294967288, %v1310_v34  ;;  %v2755_v55 = vadd.s32 4294967288, %v1311_v31  ;;  %v1214_v60 = vshra.s32 %v3805_v38, 4  ;;  %v3132_v43 = vld [vmem:[%s3932_s1] sm:$0xff] }
  0xfd   : > { %2991 = vmatpush3.bf16.xpose.msra.mxu0 %v3117_v46  ;;  %1662 = vst [vmem:[#allocation3 + $0xd8] sm:$0xff] %v2912_v32  ;;  %v1436_v28 = vcvt.s32.f32 %v2752_v44  ;;  %v1437_v40 = vcvt.s32.f32 %v2753_v3  ;;  %v1215_v51 = vshra.s32 %v3807_v36, 4  ;;  %v1276_v14 = vxor.u32 8, %v1212_v30  ;;  %v1760_v30 = vld [vmem:[%s580_s26] sm:$0x3] }
  0xfe   : > { %1663 = vst [vmem:[#allocation3 + $0x18] sm:$0xff] %v2913_v7  ;;  %v1438_v23 = vcvt.s32.f32 %v2754_v9  ;;  %v1439_v25 = vcvt.s32.f32 %v2755_v55  ;;  %v1277_v45 = vxor.u32 8, %v1213_v21  ;;  %v1278_v16 = vxor.u32 8, %v1214_v60  ;;  %v1953_v46 = vld [vmem:[%s3439_s29] sm:$0x3] }
  0xff   : > { %v2926_v48 = vpack.c.bf16 %v1437_v40, %v1436_v28  ;;  %v1279_v22 = vxor.u32 8, %v1215_v51  ;;  %v2720_v6 = vadd.s32 4294967288, %v1276_v14  ;;  %v3277_v0 = vmov 0   ;;  %v2849_v44 = vld [vmem:[%s3439_s29 + $0x2] sm:$0x3] }
 0x100   : > { %v3120_v38 = vld [vmem:[#allocation3 + $0x40] ss:$136 sps:$4 sm:$0xff]   ;;  %v2927_v36 = vpack.c.bf16 %v1439_v25, %v1438_v23  ;;  %v2721_v24 = vadd.s32 4294967288, %v1277_v45  ;;  %3082 = vset.pattern.permute.xlu0 %v3277_v0  ;;  %v2722_v49 = vadd.s32 4294967288, %v1278_v16  ;;  %3083 = vset.pattern.permute.xlu1 %v3277_v0  ;;  %v1767_v20 = vlaneseq }
 0x101   : > { %3007 = vmatpush3.bf16.xpose.msra.mxu1 %v3122_v59  ;;  %1676 = vst [vmem:[#allocation3 + $0x38] sm:$0xff] %v2926_v48  ;;  %v2723_v37 = vadd.s32 4294967288, %v1279_v22  ;;  %1763 = vperm.xlu0 %3082, %v1759_v19   ;;  %v1404_v15 = vcvt.s32.f32 %v2720_v6  ;;  %v2868_v51 = vld [vmem:[%s3439_s29 + $0x4] sm:$0x3]  ;;  %s2943_s29 = sshll.u32 %s3261_s12, 7  ;;  %s3189_s12 = sshll.u32 %s3278_s18, 4  ;;  %s3190_s12 = int_to_ptr.vmem [resolvable:$false] %s3189_s12 }
 0x102   : > { %3008 = vmatprep.subr.bf16.mxu1 %v3124_v11  ;;  %2992 = vmatprep.subr.bf16.mxu0 %v3120_v38  ;;  %1677 = vst [vmem:[#allocation3 + $0x58] sm:$0xff] %v2927_v36  ;;  %v1405_v61 = vcvt.s32.f32 %v2721_v24  ;;  %v1406_v17 = vcvt.s32.f32 %v2722_v49  ;;  %v1768_v34 = vshrl.u32 %v1767_v20, 7  ;;  %s2394_s16 = scalar_lea.hbm %s3940_s9, %s2943_s29  ;;  %s3191_s24 = scalar_lea.vmem %s3190_s12, 256 }
 0x103   : > { %v1407_v47 = vcvt.s32.f32 %v2723_v37  ;;  %2151 = vperm.xlu1 %3083, %v2848_v63   ;;  %p3192_p0 = scmp.lt.s32.totalorder %s2397_s23, %s3190_s12  ;;  %p3193_p1 = scmp.lt.s32.totalorder %s3191_s24, %s3185_s17 }
 0x104   : > { %v1978_v5 = vld [vmem:[#allocation3 + $0xd8] sm:$0xf]  ;;  %v2910_v39 = vpack.c.bf16 %v1405_v61, %v1404_v15  ;;  %v1769_v31 = vsub.s32 0, %v1768_v34  ;;  %v1773_v32 = vsub.s32 1, %v1768_v34 }
 0x105   : > { %v1979_v12 = vld [vmem:[#allocation3 + $0x18] sm:$0xf]  ;;  %v2911_v54 = vpack.c.bf16 %v1407_v47, %v1406_v17  ;;  %1956 = vperm.xlu0 %3082, %v1952_v57   ;;  %p3194_p2 = por %p3193_p1, %p3192_p0 }
 0x106   : > { %v2833_v29 = vcombine.low %v1978_v5, %v1979_v12  ;;  %1660 = vst [vmem:[#allocation3 + $0xb0] sm:$0xff] %v2910_v39  ;;  %v1770_v3 = vrot.slane %v1760_v30, %v1769_v31  ;;  %v1963_v7 = vrot.slane %v1953_v46, %v1769_v31  ;;  %v1967_v59 = vrot.slane %v1953_v46, %v1773_v32 }
 0x107   : > { %1661 = vst [vmem:[#allocation3] sm:$0xff] %v2911_v54  ;;  %2350 = vperm.xlu1 %3083, %v2867_v50   ;;  %v1774_v55 = vrot.slane %v1760_v30, %v1773_v32  ;;  %v2158_v21 = vrot.slane %v2849_v44, %v1769_v31  ;;  %v2162_v28 = vrot.slane %v2849_v44, %v1773_v32  ;;  %p3195_p3 = pnand %p3194_p2, %p3188_p13 }
 0x108   : > { %2993 = vmatpush3.bf16.xpose.msra.mxu0 %v2833_v29  ;;  %v1992_v53 = vld [vmem:[#allocation3 + $0x38] sm:$0xf]  ;;  %v2357_v16 = vrot.slane %v2868_v51, %v1769_v31  ;;  %v2361_v24 = vrot.slane %v2868_v51, %v1773_v32 }
 0x109   : > { %3009 = vmatpush3.bf16.xpose.msra.mxu1 %v3125_v58  ;;  %v1993_v35 = vld [vmem:[#allocation3 + $0x58] sm:$0xf] }
 0x10a   : > { %3010 = vmatprep.subr.bf16.mxu1 %v3126_v42  ;;  %v2840_v13 = vcombine.low %v1992_v53, %v1993_v35 }
 0x10c   : > { %2994 = vmatprep.subr.bf16.mxu0 %v2840_v13 }
 0x10e   : > { %v3123_v41 = vld [vmem:[#allocation3 + $0xb0] ss:$-176 sps:$4 sm:$0xff]  }
 0x110   : > { %2995 = vmatpush3.bf16.xpose.msra.mxu0 %v3123_v41 }
 0x111   : > { %3011 = vmatpush3.bf16.xpose.msra.mxu1 %v3127_v56 }
 0x112   : > { %3012 = vmatprep.subr.bf16.mxu1 %v3128_v62 }
 0x117   : > { %2997 = vmatmul.mubr.bf16.vlgmr.msra.gmra.mxu0 %v3132_v43 }
 0x119   : > { %3013 = vmatpush3.bf16.xpose.msra.mxu1 %v3129_v1 }
 0x120   : > { %3015 = vmatmul.mubr.bf16.vlgmr.msra.gmra.mxu1 %v3833_v18 }
 0x15d   : > { %v1752_v27 = vpop.f32.mrf.mxu0 }
 0x15f   : > { %v1754_v2 = vpop.f32.mrf.mxu0 }
 0x161   : > { %v1756_v10 = vpop.f32.mrf.mxu0 }
 0x163   : > { %v1757_v33 = vpop.f32.mrf.mxu0 }
 0x17c   : > { %v1764_v18 = vpop.permute.xlu0 %1763 }
 0x17d   : > { %v1777_v11 = vmul.f32 %v1770_v3, %v1764_v18  ;;  %v1778_v45 = vmul.f32 %v1774_v55, %v1764_v18 }
 0x17e   : > { %v2152_v40 = vpop.permute.xlu1 %2151 }
 0x17f   : > { %v2165_v19 = vmul.f32 %v2158_v21, %v2152_v40  ;;  %v2166_v48 = vmul.f32 %v2162_v28, %v2152_v40  ;;  %v1779_v38 = vmul.f32 %v1777_v11, %v1752_v27  ;;  %v1780_v49 = vmul.f32 %v1778_v45, %v1754_v2 }
 0x180   : > { %v1957_v9 = vpop.permute.xlu0 %1956 }
 0x181   : > { %v1970_v23 = vmul.f32 %v1963_v7, %v1957_v9  ;;  %v1971_v25 = vmul.f32 %v1967_v59, %v1957_v9 }
 0x182   : > { %v2351_v22 = vpop.permute.xlu1 %2350 }
 0x183   : > { %v2364_v61 = vmul.f32 %v2357_v16, %v2351_v22  ;;  %v2365_v5 = vmul.f32 %v2361_v24, %v2351_v22 }
 0x1a0   : > { %v1945_v4 = vpop.f32.mrf.mxu1 }
 0x1a1   : > { %v1972_v36 = vmul.f32 %v1970_v23, %v1945_v4 }
 0x1a2   : > { %v1947_v8 = vpop.f32.mrf.mxu1 }
 0x1a3   : > { %v1973_v6 = vmul.f32 %v1971_v25, %v1947_v8  ;;  %v1974_v17 = vadd.f32 %v1972_v36, %v1779_v38 }
 0x1a4   : > { %v1949_v26 = vpop.f32.mrf.mxu1 }
 0x1a5   : > { %v1975_v47 = vadd.f32 %v1973_v6, %v1780_v49 }
 0x1a6   : > { %v1950_v52 = vpop.f32.mrf.mxu1 }
 0x1d7   : > { %v2138_v60 = vpop.f32.mrf.mxu0 }
 0x1d8   : > { %v2167_v37 = vmul.f32 %v2165_v19, %v2138_v60 }
 0x1d9   : > { %v2140_v14 = vpop.f32.mrf.mxu0 }
 0x1da   : > { %v2168_v15 = vmul.f32 %v2166_v48, %v2140_v14  ;;  %v2169_v50 = vadd.f32 %v2167_v37, %v1974_v17 }
 0x1db   : > { %v2142_v63 = vpop.f32.mrf.mxu0 }
 0x1dc   : > { %v2170_v12 = vadd.f32 %v2168_v15, %v1975_v47 }
 0x1dd   : > { %v2143_v0 = vpop.f32.mrf.mxu0 }
 0x1e0   : > { %v2337_v57 = vpop.f32.mrf.mxu1 }
 0x1e1   : > { %v2366_v39 = vmul.f32 %v2364_v61, %v2337_v57 }
 0x1e2   : > { %v2339_v58 = vpop.f32.mrf.mxu1 }
 0x1e3   : > { %v2367_v54 = vmul.f32 %v2365_v5, %v2339_v58  ;;  %v2368_v29 = vadd.f32 %v2366_v39, %v2169_v50 }
 0x1e4   : > { %v2341_v42 = vpop.f32.mrf.mxu1 }
 0x1e5   : > { %v2369_v53 = vadd.f32 %v2367_v54, %v2170_v12 }
 0x1e6   : > { %v2342_v35 = vpop.f32.mrf.mxu1 }
 0x1e7   : > { %v2942_v13 = vpack.c.bf16 %v2369_v53, %v2368_v29 }
 0x1e9   : > { %2378 = vst [vmem:[%s551_s28] sm:$0xff] %v2942_v13 }
 0x1ea   : > { %3198 = shalt.err (!%p3195_p3)
}
 0x1eb   : > { %s3199_s15 = scalar_lea.hbm %s2394_s16, 128  ;;  %s3203_s26 = scalar_lea.hbm %s3940_s9, 256 }
 0x1ec   : > { %p3200_p5 = scmp.ne.s32.totalorder %s2394_s16, %s3199_s15  ;;  %p3204_p4 = scmp.lt.s32.totalorder %s2394_s16, %s3940_s9 }
 0x1ed   : > { %p3205_p8 = scmp.lt.s32.totalorder %s3203_s26, %s3199_s15 }
 0x1ee   : > { %p3201_p6 = pnand %p3200_p5, %p3380_p9 }
 0x1ef   : > { %p3206_p10 = por %p3205_p8, %p3204_p4 }
 0x1f0   : > { %p3202_p7 = pneg %p3201_p6 }
 0x1f2   : > { %p3207_p12 = pnand %p3206_p10, %p3202_p7 }
 0x1f4   : > { %3210 = shalt.err (!%p3207_p12)
}
 0x1f5   : > { %3022 = dma.vmem_to_hbm [thread:$0]  (%p3380_p9), %s2397_s23, 128, %s2394_s16, %s2380_s11  }
 0x1f6 PF: > { %s2408_s27 = sand.u32 1, %s3249_s30   ;;  %p3996_p13 = scmp.ge.s32.totalorder %s3269_s14, 2 }
 0x1f7   : > { %s2409_s21 = scalar_lea.sflag [#allocation6], %s2408_s27 }
 0x1f8   : > { %p3025_p0 = pnand %p3996_p13, %p3387_p11 }
 0x1fa   : > { %p3026_p1 = pneg %p3025_p0 }
 0x1fc   : > { %3244 = dma.done.wait (%p3026_p1), %s2409_s21, 128  }
 0x1fd   : > { %3246 = vsyncadd (%p3026_p1), %s2409_s21, 4294967168  ;;  %s28_s14 = sadd.s32 1, %s3269_s14   ;;  %s3997_s17 = sld [smem:[#allocation14_spill]] }
 0x1fe   : > { %p25_p2 = scmp.ge.s32.totalorder %s28_s14, 4   ;;  %s3998_s11 = sld [smem:[#allocation16_spill]] }
 0x1ff   : > { %s3999_s22 = sld [smem:[#allocation15_spill]]  ;;  %s4000_s30 = smov %s3253_s10 }
 0x200   : > { %s4002_s12 = smov %s3265_s13 }
 0x201   :  { %27 = sbr.rel (!%p25_p2) target bundleno = 8 (0x8), region = 182 }
 0x203   : > { %s4001_s10 = smov %s3997_s17 }
 0x205   : > { %s4003_s13 = smov %s3999_s22 }
 0x206   :  { %2414 = vsyncpa [#allocation5], 1 }
 0x207   :  { %2416 = vsyncpa [#allocation5 + $0x1], 1 }
 0x208   :  { %2417 = vsyncpa [#allocation9], 1 }
 0x209   :  { %2419 = vsyncpa [#allocation9 + $0x1], 1 }
 0x20a   :  { %2420 = vsyncpa [#allocation6], 1 }
 0x20b   :  { %2422 = vsyncpa [#allocation6 + $0x1], 1 }

</bundles_post_ra>
